<compile_context>
chip_gen: v5e
topology: v5e:2x2
jax: 0.10.0
libtpu: 0.0.40
codegen_flags: <defaults>
</compile_context>

<pallas_src>
import functools

import jax
import jax.numpy as jnp
from jax.experimental import pallas as pl
from jax.experimental.pallas import tpu as pltpu

BN_EPS = 1e-5
VMEM_LIMIT_BYTES = 32 * 1024 * 1024  # raise v5e's 16 MiB default; safe on v6e/v7x


def _round_up(x, m):
    return (x + m - 1) // m * m


def _pick_tile(dim, cap):
    """Largest multiple of 128 that divides `dim` and is <= cap (>=128)."""
    t = max(128, min(cap, dim) // 128 * 128)
    while dim % t != 0:
        t -= 128
    return t


def _pick_tile_n(np_dim, cap=512):
    """Output-feature tile: keep >=2 blocks on the parallel axis when possible."""
    if np_dim <= 128:
        return np_dim
    return _pick_tile(np_dim, cap=min(cap, np_dim // 2))


def _fused_linear_kernel(x_ref, w_ref, p_ref, o_ref, acc_ref, *,
                         apply_bn_relu, tk):
    k = pl.program_id(1)

    @pl.when(k == 0)
    def _():
        acc_ref[...] = jnp.zeros_like(acc_ref)

    # x is fully resident; take the (aligned) K chunk matching this grid step.
    k0 = pl.multiple_of(k * tk, 128)
    x_chunk = x_ref[:, pl.ds(k0, tk)].astype(jnp.bfloat16)  # no-op if already bf16
    # bf16 x bf16 -> f32 accumulation on the MXU.
    acc_ref[...] += jnp.dot(x_chunk, w_ref[...],
                            preferred_element_type=jnp.float32)

    @pl.when(k == pl.num_programs(1) - 1)
    def _():
        y = acc_ref[...] + p_ref[0:1, :]          # bias
        if apply_bn_relu:
            # BatchNorm1d, training-mode forward: batch mean, biased variance.
            mean = jnp.mean(y, axis=0, keepdims=True)
            var = jnp.mean((y - mean) ** 2, axis=0, keepdims=True)
            y = (y - mean) * jax.lax.rsqrt(var + BN_EPS)
            y = y * p_ref[1:2, :] + p_ref[2:3, :]  # gamma, beta
            y = jnp.maximum(y, 0.0)
        o_ref[...] = y.astype(o_ref.dtype)


def fused_linear(x, w, packed, *, apply_bn_relu, out_dtype):
    """y = x @ w + bias, optionally followed by BatchNorm1d(train) + ReLU.

    x:      (B, Kp)  f32 or bf16, Kp multiple of 128 (padded cols are zero)
    w:      (Kp, Np) bf16, pre-padded with zeros
    packed: (3, Np) f32 [bias; gamma; beta]  or  (1, Np) f32 [bias]
    Returns (B, Np) out_dtype (padded cols remain zero).
    """
    B, Kp = x.shape
    Kw, Np = w.shape
    assert Kp == Kw, (Kp, Kw)
    assert Kp % 128 == 0 and Np % 128 == 0

    tk = _pick_tile(Kp, cap=4096)
    tn = _pick_tile_n(Np, cap=512)
    grid = (Np // tn, Kp // tk)
    n_rows = packed.shape[0]

    return pl.pallas_call(
        functools.partial(_fused_linear_kernel,
                          apply_bn_relu=apply_bn_relu, tk=tk),
        out_shape=jax.ShapeDtypeStruct((B, Np), out_dtype),
        grid_spec=pltpu.PrefetchScalarGridSpec(
            num_scalar_prefetch=0,
            grid=grid,
            in_specs=[
                pl.BlockSpec((B, Kp), lambda j, k: (0, 0)),       # x, resident
                pl.BlockSpec((tk, tn), lambda j, k: (k, j)),      # w, streamed
                pl.BlockSpec((n_rows, tn), lambda j, k: (0, j)),  # bias[/g/b]
            ],
            out_specs=pl.BlockSpec((B, tn), lambda j, k: (0, j)),
            scratch_shapes=[pltpu.VMEM((B, tn), jnp.float32)],
        ),
        compiler_params=pltpu.CompilerParams(
            dimension_semantics=("parallel", "arbitrary"),
            vmem_limit_bytes=VMEM_LIMIT_BYTES),
    )(x, w, packed)


def init_params(key, in_features, hidden, num_classes):
    """Deterministic synthetic parameters, pre-padded and pre-cast (bf16 weights)."""
    dims = [in_features, hidden, hidden, hidden, num_classes]
    params = []
    for i in range(4):
        key, k1, k2 = jax.random.split(key, 3)
        K, N = dims[i], dims[i + 1]
        Kp, Np = _round_up(K, 128), _round_up(N, 128)
        scale = 1.0 / jnp.sqrt(jnp.float32(K))
        # Stored as (K, N) = transpose of PyTorch's (N, K) Linear weight.
        w = jax.random.normal(k1, (K, N), jnp.float32) * scale
        b = jax.random.normal(k2, (N,), jnp.float32) * scale
        wp = jnp.pad(w, ((0, Kp - K), (0, Np - N))).astype(jnp.bfloat16)
        if i < 3:
            # BatchNorm1d params (PyTorch default init: gamma=1, beta=0),
            # zero-padded so padded output columns stay exactly zero.
            packed = jnp.stack([
                jnp.pad(b, (0, Np - N)),
                jnp.pad(jnp.ones((N,), jnp.float32), (0, Np - N)),
                jnp.pad(jnp.zeros((N,), jnp.float32), (0, Np - N)),
            ], axis=0)
        else:
            packed = jnp.pad(b, (0, Np - N)).reshape(1, Np)
        params.append((wp, packed))
    return params


def imagenet_shallow_mlp(x_nchw, params, num_classes):
    B = x_nchw.shape[0]
    h = x_nchw.reshape(B, -1).astype(jnp.float32)  # nn.Flatten on NCHW
    K = h.shape[1]
    Kp = _round_up(K, 128)
    if Kp != K:  # only the raw input may need padding; weights are pre-padded
        h = jnp.pad(h, ((0, 0), (0, Kp - K)))
    n_layers = len(params)
    for li, (w, packed) in enumerate(params):
        is_hidden = packed.shape[0] == 3
        # Hidden activations are carried in bf16 (halves inter-layer HBM traffic);
        # the classifier emits f32 logits.
        out_dtype = jnp.bfloat16 if li < n_layers - 1 else jnp.float32
        h = fused_linear(h, w, packed, apply_bn_relu=is_hidden,
                         out_dtype=out_dtype)
    return h[:, :num_classes]


if __name__ == "__main__":
    # Scaled-down shapes consistent with the module structure:
    # original: (B, 3, 224, 224) -> 150528 -> 8192 x3 -> 1000
    # here:     (B, 4,  16,  16) ->   1024 ->  256 x3 -> 1000
    B, C, H, W = 2, 4, 16, 16
    IN_FEATURES = C * H * W      # 1024
    HIDDEN = 256
    NUM_CLASSES = 1000

    key = jax.random.PRNGKey(0)
    key, kx = jax.random.split(key)
    x = jax.random.normal(kx, (B, C, H, W), jnp.float32)

    params = init_params(key, IN_FEATURES, HIDDEN, NUM_CLASSES)

    fwd = jax.jit(imagenet_shallow_mlp, static_argnums=2)
    out = fwd(x, params, NUM_CLASSES)
    out = jax.block_until_ready(out)
    assert out.shape == (B, NUM_CLASSES), out.shape
    assert out.dtype == jnp.float32

    print("KERNEL_OK")
</pallas_src>

<mosaic_0001>
module attributes {stable_mosaic.version = 11 : i64} {
  func.func @_fused_linear_kernel(%arg0: i32, %arg1: i32, %arg2: memref<2x1024xf32, #tpu.memory_space<vmem>>, %arg3: memref<1024x128xbf16, #tpu.memory_space<vmem>>, %arg4: memref<3x128xf32, #tpu.memory_space<vmem>>, %arg5: memref<2x128xbf16, #tpu.memory_space<vmem>>, %arg6: memref<2x128xf32, #tpu.memory_space<vmem>>) attributes {dimension_semantics = [#tpu.dimension_semantics<parallel>, #tpu.dimension_semantics<arbitrary>], iteration_bounds = array<i64: 2, 1>, scalar_prefetch = 0 : i64, scratch_operands = 1 : i64, tpu.core_type = #tpu.core_type<tc>, window_params = [{pipeline_mode = #tpu.pipeline_mode<synchronous>, transform_indices = @transform_0, window_bounds = array<i64: 2, 1024>}, {transform_indices = @transform_1, window_bounds = array<i64: 1024, 128>}, {transform_indices = @transform_2, window_bounds = array<i64: 3, 128>}, {transform_indices = @transform_3, window_bounds = array<i64: 2, 128>}]} {
    %c0_i32 = arith.constant 0 : i32
    %0 = arith.cmpi eq, %arg1, %c0_i32 : i32
    %1 = arith.extui %0 : i1 to i32
    %c0_i32_0 = arith.constant 0 : i32
    %2 = arith.cmpi ne, %1, %c0_i32_0 : i32
    scf.if %2 {
      %cst_9 = arith.constant 0.000000e+00 : f32
      %16 = vector.broadcast %cst_9 : f32 to vector<2x128xf32>
      %c0_10 = arith.constant 0 : index
      %c0_11 = arith.constant 0 : index
      %17 = vector.load %arg6[%c0_10, %c0_11] : memref<2x128xf32, #tpu.memory_space<vmem>>, vector<2x128xf32>
      tpu.vector_store %arg6[%c0_10, %c0_11], %16 {strides = array<i32>} : memref<2x128xf32, #tpu.memory_space<vmem>>, vector<2x128xf32>,
    } else {
    }
    %c1024_i32 = arith.constant 1024 : i32
    %3 = arith.muli %arg1, %c1024_i32 : i32
    %4 = tpu.assume_multiple %3, 128 : i32
    %c0 = arith.constant 0 : index
    %5 = arith.index_cast %4 : i32 to index
    %6 = vector.load %arg2[%c0, %5] : memref<2x1024xf32, #tpu.memory_space<vmem>>, vector<2x1024xf32>
    %7 = arith.truncf %6 : vector<2x1024xf32> to vector<2x1024xbf16>
    %c0_1 = arith.constant 0 : index
    %c0_2 = arith.constant 0 : index
    %8 = vector.load %arg6[%c0_1, %c0_2] : memref<2x128xf32, #tpu.memory_space<vmem>>, vector<2x128xf32>
    %c0_3 = arith.constant 0 : index
    %c0_4 = arith.constant 0 : index
    %9 = vector.load %arg3[%c0_3, %c0_4] : memref<1024x128xbf16, #tpu.memory_space<vmem>>, vector<1024x128xbf16>
    %cst = arith.constant dense<0.000000e+00> : vector<2x128xf32>
    %10 = tpu.matmul %7, %9, %cst {dimension_numbers = #tpu.dot_dimension_numbers<[1], [0], [0], [1], [0, 0, 1, 1], [], []>} : vector<2x1024xbf16>, vector<1024x128xbf16>, vector<2x128xf32> -> vector<2x128xf32>
    %11 = arith.addf %8, %10 : vector<2x128xf32>
    %c0_5 = arith.constant 0 : index
    %c0_6 = arith.constant 0 : index
    %12 = vector.load %arg6[%c0_5, %c0_6] : memref<2x128xf32, #tpu.memory_space<vmem>>, vector<2x128xf32>
    tpu.vector_store %arg6[%c0_5, %c0_6], %11 {strides = array<i32>} : memref<2x128xf32, #tpu.memory_space<vmem>>, vector<2x128xf32>,
    %c0_i32_7 = arith.constant 0 : i32
    %13 = arith.cmpi eq, %arg1, %c0_i32_7 : i32
    %14 = arith.extui %13 : i1 to i32
    %c0_i32_8 = arith.constant 0 : i32
    %15 = arith.cmpi ne, %14, %c0_i32_8 : i32
    scf.if %15 {
      %c0_9 = arith.constant 0 : index
      %c0_10 = arith.constant 0 : index
      %16 = vector.load %arg6[%c0_9, %c0_10] : memref<2x128xf32, #tpu.memory_space<vmem>>, vector<2x128xf32>
      %c0_11 = arith.constant 0 : index
      %c0_12 = arith.constant 0 : index
      %17 = vector.load %arg4[%c0_11, %c0_12] : memref<3x128xf32, #tpu.memory_space<vmem>>, vector<1x128xf32>
      %18 = vector.broadcast %17 : vector<1x128xf32> to vector<2x128xf32>
      %19 = arith.addf %16, %18 : vector<2x128xf32>
      %cst_13 = arith.constant dense<0.000000e+00> : vector<128xf32>
      %20 = vector.multi_reduction <add>, %19, %cst_13 [0] : vector<2x128xf32> to vector<128xf32>
      %21 = vector.shape_cast %20 : vector<128xf32> to vector<1x128xf32>
      %cst_14 = arith.constant 2.000000e+00 : f32
      %22 = vector.broadcast %cst_14 : f32 to vector<1x128xf32>
      %23 = arith.divf %21, %22 : vector<1x128xf32>
      %24 = vector.broadcast %23 : vector<1x128xf32> to vector<2x128xf32>
      %25 = arith.subf %19, %24 : vector<2x128xf32>
      %26 = arith.mulf %25, %25 : vector<2x128xf32>
      %cst_15 = arith.constant dense<0.000000e+00> : vector<128xf32>
      %27 = vector.multi_reduction <add>, %26, %cst_15 [0] : vector<2x128xf32> to vector<128xf32>
      %28 = vector.shape_cast %27 : vector<128xf32> to vector<1x128xf32>
      %cst_16 = arith.constant 2.000000e+00 : f32
      %29 = vector.broadcast %cst_16 : f32 to vector<1x128xf32>
      %30 = arith.divf %28, %29 : vector<1x128xf32>
      %31 = vector.broadcast %23 : vector<1x128xf32> to vector<2x128xf32>
      %32 = arith.subf %19, %31 : vector<2x128xf32>
      %cst_17 = arith.constant 9.99999974E-6 : f32
      %33 = vector.broadcast %cst_17 : f32 to vector<1x128xf32>
      %34 = arith.addf %30, %33 : vector<1x128xf32>
      %35 = math.rsqrt %34 : vector<1x128xf32>
      %36 = vector.broadcast %35 : vector<1x128xf32> to vector<2x128xf32>
      %37 = arith.mulf %32, %36 : vector<2x128xf32>
      %c1 = arith.constant 1 : index
      %c0_18 = arith.constant 0 : index
      %38 = vector.load %arg4[%c1, %c0_18] : memref<3x128xf32, #tpu.memory_space<vmem>>, vector<1x128xf32>
      %39 = vector.broadcast %38 : vector<1x128xf32> to vector<2x128xf32>
      %40 = arith.mulf %37, %39 : vector<2x128xf32>
      %c2 = arith.constant 2 : index
      %c0_19 = arith.constant 0 : index
      %41 = vector.load %arg4[%c2, %c0_19] : memref<3x128xf32, #tpu.memory_space<vmem>>, vector<1x128xf32>
      %42 = vector.broadcast %41 : vector<1x128xf32> to vector<2x128xf32>
      %43 = arith.addf %40, %42 : vector<2x128xf32>
      %cst_20 = arith.constant 0.000000e+00 : f32
      %44 = vector.broadcast %cst_20 : f32 to vector<2x128xf32>
      %45 = arith.maximumf %43, %44 : vector<2x128xf32>
      %46 = arith.truncf %45 : vector<2x128xf32> to vector<2x128xbf16>
      %c0_21 = arith.constant 0 : index
      %c0_22 = arith.constant 0 : index
      %47 = vector.load %arg5[%c0_21, %c0_22] : memref<2x128xbf16, #tpu.memory_space<vmem>>, vector<2x128xbf16>
      tpu.vector_store %arg5[%c0_21, %c0_22], %46 {strides = array<i32>} : memref<2x128xbf16, #tpu.memory_space<vmem>>, vector<2x128xbf16>,
    } else {
    }
    return
  }
  func.func @transform_0(%arg0: i32, %arg1: i32) -> (i32, i32) {
    %c0_i32 = arith.constant 0 : i32
    %c0_i32_0 = arith.constant 0 : i32
    %c0_i32_1 = arith.constant 0 : i32
    return %c0_i32, %c0_i32_0 : i32, i32
  }
  func.func @transform_1(%arg0: i32, %arg1: i32) -> (i32, i32) {
    %c0_i32 = arith.constant 0 : i32
    return %arg1, %arg0 : i32, i32
  }
  func.func @transform_2(%arg0: i32, %arg1: i32) -> (i32, i32) {
    %c0_i32 = arith.constant 0 : i32
    %c0_i32_0 = arith.constant 0 : i32
    return %c0_i32, %arg0 : i32, i32
  }
  func.func @transform_3(%arg0: i32, %arg1: i32) -> (i32, i32) {
    %c0_i32 = arith.constant 0 : i32
    %c0_i32_0 = arith.constant 0 : i32
    return %c0_i32, %arg0 : i32, i32
  }
}

module attributes {stable_mosaic.version = 11 : i64} {
  func.func @_fused_linear_kernel(%arg0: i32, %arg1: i32, %arg2: memref<2x256xbf16, #tpu.memory_space<vmem>>, %arg3: memref<256x128xbf16, #tpu.memory_space<vmem>>, %arg4: memref<3x128xf32, #tpu.memory_space<vmem>>, %arg5: memref<2x128xbf16, #tpu.memory_space<vmem>>, %arg6: memref<2x128xf32, #tpu.memory_space<vmem>>) attributes {dimension_semantics = [#tpu.dimension_semantics<parallel>, #tpu.dimension_semantics<arbitrary>], iteration_bounds = array<i64: 2, 1>, scalar_prefetch = 0 : i64, scratch_operands = 1 : i64, tpu.core_type = #tpu.core_type<tc>, window_params = [{pipeline_mode = #tpu.pipeline_mode<synchronous>, transform_indices = @transform_0, window_bounds = array<i64: 2, 256>}, {transform_indices = @transform_1, window_bounds = array<i64: 256, 128>}, {transform_indices = @transform_2, window_bounds = array<i64: 3, 128>}, {transform_indices = @transform_3, window_bounds = array<i64: 2, 128>}]} {
    %c0_i32 = arith.constant 0 : i32
    %0 = arith.cmpi eq, %arg1, %c0_i32 : i32
    %1 = arith.extui %0 : i1 to i32
    %c0_i32_0 = arith.constant 0 : i32
    %2 = arith.cmpi ne, %1, %c0_i32_0 : i32
    scf.if %2 {
      %cst_9 = arith.constant 0.000000e+00 : f32
      %15 = vector.broadcast %cst_9 : f32 to vector<2x128xf32>
      %c0_10 = arith.constant 0 : index
      %c0_11 = arith.constant 0 : index
      %16 = vector.load %arg6[%c0_10, %c0_11] : memref<2x128xf32, #tpu.memory_space<vmem>>, vector<2x128xf32>
      tpu.vector_store %arg6[%c0_10, %c0_11], %15 {strides = array<i32>} : memref<2x128xf32, #tpu.memory_space<vmem>>, vector<2x128xf32>,
    } else {
    }
    %c256_i32 = arith.constant 256 : i32
    %3 = arith.muli %arg1, %c256_i32 : i32
    %4 = tpu.assume_multiple %3, 128 : i32
    %c0 = arith.constant 0 : index
    %5 = arith.index_cast %4 : i32 to index
    %6 = vector.load %arg2[%c0, %5] : memref<2x256xbf16, #tpu.memory_space<vmem>>, vector<2x256xbf16>
    %c0_1 = arith.constant 0 : index
    %c0_2 = arith.constant 0 : index
    %7 = vector.load %arg6[%c0_1, %c0_2] : memref<2x128xf32, #tpu.memory_space<vmem>>, vector<2x128xf32>
    %c0_3 = arith.constant 0 : index
    %c0_4 = arith.constant 0 : index
    %8 = vector.load %arg3[%c0_3, %c0_4] : memref<256x128xbf16, #tpu.memory_space<vmem>>, vector<256x128xbf16>
    %cst = arith.constant dense<0.000000e+00> : vector<2x128xf32>
    %9 = tpu.matmul %6, %8, %cst {dimension_numbers = #tpu.dot_dimension_numbers<[1], [0], [0], [1], [0, 0, 1, 1], [], []>} : vector<2x256xbf16>, vector<256x128xbf16>, vector<2x128xf32> -> vector<2x128xf32>
    %10 = arith.addf %7, %9 : vector<2x128xf32>
    %c0_5 = arith.constant 0 : index
    %c0_6 = arith.constant 0 : index
    %11 = vector.load %arg6[%c0_5, %c0_6] : memref<2x128xf32, #tpu.memory_space<vmem>>, vector<2x128xf32>
    tpu.vector_store %arg6[%c0_5, %c0_6], %10 {strides = array<i32>} : memref<2x128xf32, #tpu.memory_space<vmem>>, vector<2x128xf32>,
    %c0_i32_7 = arith.constant 0 : i32
    %12 = arith.cmpi eq, %arg1, %c0_i32_7 : i32
    %13 = arith.extui %12 : i1 to i32
    %c0_i32_8 = arith.constant 0 : i32
    %14 = arith.cmpi ne, %13, %c0_i32_8 : i32
    scf.if %14 {
      %c0_9 = arith.constant 0 : index
      %c0_10 = arith.constant 0 : index
      %15 = vector.load %arg6[%c0_9, %c0_10] : memref<2x128xf32, #tpu.memory_space<vmem>>, vector<2x128xf32>
      %c0_11 = arith.constant 0 : index
      %c0_12 = arith.constant 0 : index
      %16 = vector.load %arg4[%c0_11, %c0_12] : memref<3x128xf32, #tpu.memory_space<vmem>>, vector<1x128xf32>
      %17 = vector.broadcast %16 : vector<1x128xf32> to vector<2x128xf32>
      %18 = arith.addf %15, %17 : vector<2x128xf32>
      %cst_13 = arith.constant dense<0.000000e+00> : vector<128xf32>
      %19 = vector.multi_reduction <add>, %18, %cst_13 [0] : vector<2x128xf32> to vector<128xf32>
      %20 = vector.shape_cast %19 : vector<128xf32> to vector<1x128xf32>
      %cst_14 = arith.constant 2.000000e+00 : f32
      %21 = vector.broadcast %cst_14 : f32 to vector<1x128xf32>
      %22 = arith.divf %20, %21 : vector<1x128xf32>
      %23 = vector.broadcast %22 : vector<1x128xf32> to vector<2x128xf32>
      %24 = arith.subf %18, %23 : vector<2x128xf32>
      %25 = arith.mulf %24, %24 : vector<2x128xf32>
      %cst_15 = arith.constant dense<0.000000e+00> : vector<128xf32>
      %26 = vector.multi_reduction <add>, %25, %cst_15 [0] : vector<2x128xf32> to vector<128xf32>
      %27 = vector.shape_cast %26 : vector<128xf32> to vector<1x128xf32>
      %cst_16 = arith.constant 2.000000e+00 : f32
      %28 = vector.broadcast %cst_16 : f32 to vector<1x128xf32>
      %29 = arith.divf %27, %28 : vector<1x128xf32>
      %30 = vector.broadcast %22 : vector<1x128xf32> to vector<2x128xf32>
      %31 = arith.subf %18, %30 : vector<2x128xf32>
      %cst_17 = arith.constant 9.99999974E-6 : f32
      %32 = vector.broadcast %cst_17 : f32 to vector<1x128xf32>
      %33 = arith.addf %29, %32 : vector<1x128xf32>
      %34 = math.rsqrt %33 : vector<1x128xf32>
      %35 = vector.broadcast %34 : vector<1x128xf32> to vector<2x128xf32>
      %36 = arith.mulf %31, %35 : vector<2x128xf32>
      %c1 = arith.constant 1 : index
      %c0_18 = arith.constant 0 : index
      %37 = vector.load %arg4[%c1, %c0_18] : memref<3x128xf32, #tpu.memory_space<vmem>>, vector<1x128xf32>
      %38 = vector.broadcast %37 : vector<1x128xf32> to vector<2x128xf32>
      %39 = arith.mulf %36, %38 : vector<2x128xf32>
      %c2 = arith.constant 2 : index
      %c0_19 = arith.constant 0 : index
      %40 = vector.load %arg4[%c2, %c0_19] : memref<3x128xf32, #tpu.memory_space<vmem>>, vector<1x128xf32>
      %41 = vector.broadcast %40 : vector<1x128xf32> to vector<2x128xf32>
      %42 = arith.addf %39, %41 : vector<2x128xf32>
      %cst_20 = arith.constant 0.000000e+00 : f32
      %43 = vector.broadcast %cst_20 : f32 to vector<2x128xf32>
      %44 = arith.maximumf %42, %43 : vector<2x128xf32>
      %45 = arith.truncf %44 : vector<2x128xf32> to vector<2x128xbf16>
      %c0_21 = arith.constant 0 : index
      %c0_22 = arith.constant 0 : index
      %46 = vector.load %arg5[%c0_21, %c0_22] : memref<2x128xbf16, #tpu.memory_space<vmem>>, vector<2x128xbf16>
      tpu.vector_store %arg5[%c0_21, %c0_22], %45 {strides = array<i32>} : memref<2x128xbf16, #tpu.memory_space<vmem>>, vector<2x128xbf16>,
    } else {
    }
    return
  }
  func.func @transform_0(%arg0: i32, %arg1: i32) -> (i32, i32) {
    %c0_i32 = arith.constant 0 : i32
    %c0_i32_0 = arith.constant 0 : i32
    %c0_i32_1 = arith.constant 0 : i32
    return %c0_i32, %c0_i32_0 : i32, i32
  }
  func.func @transform_1(%arg0: i32, %arg1: i32) -> (i32, i32) {
    %c0_i32 = arith.constant 0 : i32
    return %arg1, %arg0 : i32, i32
  }
  func.func @transform_2(%arg0: i32, %arg1: i32) -> (i32, i32) {
    %c0_i32 = arith.constant 0 : i32
    %c0_i32_0 = arith.constant 0 : i32
    return %c0_i32, %arg0 : i32, i32
  }
  func.func @transform_3(%arg0: i32, %arg1: i32) -> (i32, i32) {
    %c0_i32 = arith.constant 0 : i32
    %c0_i32_0 = arith.constant 0 : i32
    return %c0_i32, %arg0 : i32, i32
  }
}

module attributes {stable_mosaic.version = 11 : i64} {
  func.func @_fused_linear_kernel(%arg0: i32, %arg1: i32, %arg2: memref<2x256xbf16, #tpu.memory_space<vmem>>, %arg3: memref<256x512xbf16, #tpu.memory_space<vmem>>, %arg4: memref<1x512xf32, #tpu.memory_space<vmem>>, %arg5: memref<2x512xf32, #tpu.memory_space<vmem>>, %arg6: memref<2x512xf32, #tpu.memory_space<vmem>>) attributes {dimension_semantics = [#tpu.dimension_semantics<parallel>, #tpu.dimension_semantics<arbitrary>], iteration_bounds = array<i64: 2, 1>, scalar_prefetch = 0 : i64, scratch_operands = 1 : i64, tpu.core_type = #tpu.core_type<tc>, window_params = [{pipeline_mode = #tpu.pipeline_mode<synchronous>, transform_indices = @transform_0, window_bounds = array<i64: 2, 256>}, {transform_indices = @transform_1, window_bounds = array<i64: 256, 512>}, {transform_indices = @transform_2, window_bounds = array<i64: 1, 512>}, {transform_indices = @transform_3, window_bounds = array<i64: 2, 512>}]} {
    %c0_i32 = arith.constant 0 : i32
    %0 = arith.cmpi eq, %arg1, %c0_i32 : i32
    %1 = arith.extui %0 : i1 to i32
    %c0_i32_0 = arith.constant 0 : i32
    %2 = arith.cmpi ne, %1, %c0_i32_0 : i32
    scf.if %2 {
      %cst_9 = arith.constant 0.000000e+00 : f32
      %15 = vector.broadcast %cst_9 : f32 to vector<2x512xf32>
      %c0_10 = arith.constant 0 : index
      %c0_11 = arith.constant 0 : index
      %16 = vector.load %arg6[%c0_10, %c0_11] : memref<2x512xf32, #tpu.memory_space<vmem>>, vector<2x512xf32>
      tpu.vector_store %arg6[%c0_10, %c0_11], %15 {strides = array<i32>} : memref<2x512xf32, #tpu.memory_space<vmem>>, vector<2x512xf32>,
    } else {
    }
    %c256_i32 = arith.constant 256 : i32
    %3 = arith.muli %arg1, %c256_i32 : i32
    %4 = tpu.assume_multiple %3, 128 : i32
    %c0 = arith.constant 0 : index
    %5 = arith.index_cast %4 : i32 to index
    %6 = vector.load %arg2[%c0, %5] : memref<2x256xbf16, #tpu.memory_space<vmem>>, vector<2x256xbf16>
    %c0_1 = arith.constant 0 : index
    %c0_2 = arith.constant 0 : index
    %7 = vector.load %arg6[%c0_1, %c0_2] : memref<2x512xf32, #tpu.memory_space<vmem>>, vector<2x512xf32>
    %c0_3 = arith.constant 0 : index
    %c0_4 = arith.constant 0 : index
    %8 = vector.load %arg3[%c0_3, %c0_4] : memref<256x512xbf16, #tpu.memory_space<vmem>>, vector<256x512xbf16>
    %cst = arith.constant dense<0.000000e+00> : vector<2x512xf32>
    %9 = tpu.matmul %6, %8, %cst {dimension_numbers = #tpu.dot_dimension_numbers<[1], [0], [0], [1], [0, 0, 1, 1], [], []>} : vector<2x256xbf16>, vector<256x512xbf16>, vector<2x512xf32> -> vector<2x512xf32>
    %10 = arith.addf %7, %9 : vector<2x512xf32>
    %c0_5 = arith.constant 0 : index
    %c0_6 = arith.constant 0 : index
    %11 = vector.load %arg6[%c0_5, %c0_6] : memref<2x512xf32, #tpu.memory_space<vmem>>, vector<2x512xf32>
    tpu.vector_store %arg6[%c0_5, %c0_6], %10 {strides = array<i32>} : memref<2x512xf32, #tpu.memory_space<vmem>>, vector<2x512xf32>,
    %c0_i32_7 = arith.constant 0 : i32
    %12 = arith.cmpi eq, %arg1, %c0_i32_7 : i32
    %13 = arith.extui %12 : i1 to i32
    %c0_i32_8 = arith.constant 0 : i32
    %14 = arith.cmpi ne, %13, %c0_i32_8 : i32
    scf.if %14 {
      %c0_9 = arith.constant 0 : index
      %c0_10 = arith.constant 0 : index
      %15 = vector.load %arg6[%c0_9, %c0_10] : memref<2x512xf32, #tpu.memory_space<vmem>>, vector<2x512xf32>
      %c0_11 = arith.constant 0 : index
      %c0_12 = arith.constant 0 : index
      %16 = vector.load %arg4[%c0_11, %c0_12] : memref<1x512xf32, #tpu.memory_space<vmem>>, vector<1x512xf32>
      %17 = vector.broadcast %16 : vector<1x512xf32> to vector<2x512xf32>
      %18 = arith.addf %15, %17 : vector<2x512xf32>
      %c0_13 = arith.constant 0 : index
      %c0_14 = arith.constant 0 : index
      %19 = vector.load %arg5[%c0_13, %c0_14] : memref<2x512xf32, #tpu.memory_space<vmem>>, vector<2x512xf32>
      tpu.vector_store %arg5[%c0_13, %c0_14], %18 {strides = array<i32>} : memref<2x512xf32, #tpu.memory_space<vmem>>, vector<2x512xf32>,
    } else {
    }
    return
  }
  func.func @transform_0(%arg0: i32, %arg1: i32) -> (i32, i32) {
    %c0_i32 = arith.constant 0 : i32
    %c0_i32_0 = arith.constant 0 : i32
    %c0_i32_1 = arith.constant 0 : i32
    return %c0_i32, %c0_i32_0 : i32, i32
  }
  func.func @transform_1(%arg0: i32, %arg1: i32) -> (i32, i32) {
    %c0_i32 = arith.constant 0 : i32
    return %arg1, %arg0 : i32, i32
  }
  func.func @transform_2(%arg0: i32, %arg1: i32) -> (i32, i32) {
    %c0_i32 = arith.constant 0 : i32
    %c0_i32_0 = arith.constant 0 : i32
    return %c0_i32, %arg0 : i32, i32
  }
  func.func @transform_3(%arg0: i32, %arg1: i32) -> (i32, i32) {
    %c0_i32 = arith.constant 0 : i32
    %c0_i32_0 = arith.constant 0 : i32
    return %c0_i32, %arg0 : i32, i32
  }
}

</mosaic_0001>

<bundles_post_ra>
// kernel: imagenet_shallow_mlp.5
= control target key start
LH: loop header
LB: loop body
LE: loop exit
PB: predicated region body
PF: predicated region fallthrough
CT: control target
= control target key end

     0   :  { %8 = vsyncpa [#allocation4], 0  ;;  %s920_s0 = inlined_call_operand.vmem [shape: bf16[2,256], index: 0, kind: input, shape index: {}]   ;;  %s921_s1 = inlined_call_operand.hbm [shape: bf16[256,256], index: 1, kind: input, shape index: {}]   ;;  %s922_s2 = inlined_call_operand.vmem [shape: f32[3,256], index: 2, kind: input, shape index: {}]   ;;  %s923_s3 = inlined_call_operand.vmem [shape: bf16[2,256], index: 3, kind: output, shape index: {}]  }
   0x1   :  { %10 = vsyncpa [#allocation4 + $0x1], 0  ;;  %s797_s12 = smov 0   ;;  %s799_s13 = smov 0  }
   0x2   :  { %s801_s14 = smov 0   ;;  %s803_s15 = smov 0  }
   0x3   :  { %s805_s16 = smov 0   ;;  %s807_s17 = smov 0  }
   0x4 LB: > { %s532_s18 = sadd.s32 4294967295, %s770_s17   ;;  %s28_s19 = sadd.s32 1, %s766_s16  ;;  %s770_s17 = sphi %s807_s17, %s16_s17   ;;  %s766_s16 = sphi %s805_s16, %s930_s16   ;;  %s762_s15 = sphi %s803_s15, %s929_s15   ;;  %s758_s14 = sphi %s801_s14, %s928_s14   ;;  %s754_s13 = sphi %s799_s13, %s927_s13   ;;  %s750_s12 = sphi %s797_s12, %s926_s12  }
   0x5   : > { %p30_p0 = scmp.ge.s32.totalorder %s28_s19, 2  ;;  %s58_s20 = sadd.s32 1, %s758_s14 }
   0x6   : > { %p65_p1 = scmp.ne.s32.totalorder %s758_s14, %s754_s13  ;;  %p66_p2 = scmp.eq.s32.totalorder %s770_s17, 0 }
   0x7   : > { %s932_s19 = smov (%p30_p0, %s28_s19), 0  ;;  %p71_p4 = scmp.ne.s32.totalorder %s754_s13, %s750_s12 }
   0x8   : > { %p833_p3 = por %p66_p2, %p65_p1  ;;  %s54_s22 = ssub.s32 %s766_s16, %s932_s19 }
   0x9   : > { %p72_p5 = scmp.eq.s32.totalorder %s532_s18, 0  ;;  %p56_p6 = scmp.eq.s32.totalorder %s54_s22, 0 }
   0xa   : > { %p629_p8 = scmp.lt.s32.totalorder %s770_s17, 2  ;;  %s150_s25 = sand.u32 1, %s758_s14  }
   0xb   : > { %p840_p7 = por %p72_p5, %p71_p4  ;;  %s537_s26 = sshll.u32 %s766_s16, 2 }
   0xc   : > { %s846_s24 = scalar_select %p56_p6, %s758_s14, %s58_s20  }
   0xd   : > { %s536_s27 = sshll.u32 %s150_s25, 7  ;;  %s161_s30 = scalar_lea.hbm %s921_s1, %s537_s26 }
   0xe   : > { %s162_s4 = sshll.u32 %s161_s30, 4  ;;  %s154_s5 = scalar_lea.vmem [#allocation3], %s536_s27  ;;  %s163_s4 = int_to_ptr.hbm [resolvable:$true] %s162_s4 }
   0xf   : > { %s164_s6 = sshll.u32 %s154_s5, 4  ;;  %p626_p9 = pnand %p629_p8, %p833_p3  ;;  %s165_s6 = int_to_ptr.vmem [resolvable:$true] %s164_s6 }
  0x10   : > { %p538_p10 = scmp.ge.s32.totalorder %s770_s17, 1  ;;  %s151_s7 = scalar_lea.sflag [#allocation4], %s150_s25 }
  0x11   : > { %s772_s8 = smov 128   ;;  %s773_s9 = smov 64  }
  0x12   : > { %s774_s10 = smov 4   ;;  %p179_p11 = scmp.lt.s32.totalorder %s770_s17, 3 }
  0x13   : > { %628 = dma.hbm_to_vmem [thread:$0]  (!%p626_p9), %s163_s4, 2048, %s165_s6, %s151_s7, %s772_s8, %s773_s9, %s774_s10  }
  0x14   : > { %p180_p12 = pnand %p538_p10, %p179_p11 }
  0x15   : > { %s185_s11 = sand.u32 (!%p180_p12), 1, %s754_s13  }
  0x16   : > { %183 = sbr.rel (%p180_p12) target bundleno = 266 (0x10a), region = 32  ;;  %s539_s12 = sshll.u32 (!%p180_p12), %s185_s11, 7 }
  0x17   : > { %s186_s18 = scalar_lea.sflag (!%p180_p12), [#allocation4], %s185_s11  ;;  %s858_s20 = scalar_lea.vmem (!%p180_p12), [#allocation3], %s539_s12 }
  0x1b   : > { %745 = dma.done.wait (%p840_p7), %s186_s18, 2048  }
  0x1c   : > { %747 = vsyncadd (%p840_p7), %s186_s18, 4294965248  ;;  %v614_v0 = vld [vmem:[%s858_s20 + $0x38] sm:$0xff]  ;;  %v613_v2 = vld [vmem:[%s858_s20 + $0x30] sm:$0xff]  ;;  %p216_p13 = scmp.lt.s32.totalorder %s762_s15, 1  ;;  %v775_v19 = vmov 0.0   ;;  %v776_v23 = vmov 2.0  }
  0x1d   : > { %v622_v1 = vld [vmem:[%s858_s20 + $0x78] sm:$0xff]  ;;  %368 = vmatpush.bf16.msra.mxu0 %v614_v0  ;;  %v621_v3 = vld [vmem:[%s858_s20 + $0x70] sm:$0xff]  ;;  %v612_v5 = vld [vmem:[%s858_s20 + $0x28] sm:$0xff]  ;;  %227 = vst [vmem:[#allocation2] sm:$0x3] %v775_v19  ;;  %686 = vrcp.f32 %v776_v23  ;;  %vm403_vm0 = vcmask 1041408  }
  0x1e   : > { %381 = vmatpush.bf16.msra.mxu1 %v622_v1  ;;  %v232_v4 = vld [vmem:[%s920_s0] sm:$0x3]  ;;  %v620_v6 = vld [vmem:[%s858_s20 + $0x68] sm:$0xff]  ;;  %v611_v7 = vld [vmem:[%s858_s20 + $0x20] sm:$0xff]  ;;  %s934_s15 = smov (!%p216_p13, %s762_s15), 1 }
  0x1f   : > { %267 = vst [vmem:[#allocation1] ss:$9 sm:$0xff] %v232_v4  ;;  %v619_v8 = vld [vmem:[%s858_s20 + $0x60] sm:$0xff]  ;;  %v610_v9 = vld [vmem:[%s858_s20 + $0x18] sm:$0xff]  ;;  %v609_v11 = vld [vmem:[%s858_s20 + $0x10] sm:$0xff]  ;;  %s540_s23 = sshll.u32 %s934_s15, 2  ;;  %s222_s30 = scalar_lea.vmem %s923_s3, %s934_s15 }
  0x20   : > { %v618_v10 = vld [vmem:[%s858_s20 + $0x58] sm:$0xff]  ;;  %v617_v12 = vld [vmem:[%s858_s20 + $0x50] sm:$0xff]  ;;  %v608_v13 = vld [vmem:[%s858_s20 + $0x8] sm:$0xff]  ;;  %s891_s27 = scalar_lea.vmem %s922_s2, %s540_s23 }
  0x21   : > { %369 = vmatpush.bf16.msra.mxu0 %v613_v2  ;;  %v616_v14 = vld [vmem:[%s858_s20 + $0x48] sm:$0xff]  ;;  %v607_v15 = vld [vmem:[%s858_s20] sm:$0xff]  ;;  %v683_v29 = vld [vmem:[%s891_s27] ss:$0 sm:$0xff] }
  0x22   : > { %382 = vmatpush.bf16.msra.mxu1 %v621_v3  ;;  %v615_v16 = vld [vmem:[%s858_s20 + $0x40] sm:$0xff]  ;;  %v684_v62 = vld [vmem:[%s891_s27 + $0x1] ss:$0 sm:$0xff]  ;;  %v685_v1 = vld [vmem:[%s891_s27 + $0x2] ss:$0 sm:$0xff] }
  0x23   : > { %v687_v26 = vpop.eup %686 }
  0x24   : > { %v233_v21 = vld [vmem:[#allocation2] sm:$0x3]  ;;  %v412_v30 = vmul.f32 2.0, %v687_v26  ;;  %vm416_vm1 = vweird.f32 %v687_v26 }
  0x25   : > { %370 = vmatpush.bf16.msra.mxu0 %v612_v5 }
  0x26   : > { %383 = vmatpush.bf16.msra.mxu1 %v620_v6  ;;  %v268_v17 = vld [vmem:[#allocation1] sm:$0xff]  ;;  %v269_v18 = vld [vmem:[#allocation1 + $0x9] sm:$0xff]  ;;  %v413_v33 = vsub.f32 1.0, %v412_v30 }
  0x28   : > { %v414_v36 = vmul.f32 %v687_v26, %v413_v33 }
  0x29   : > { %371 = vmatpush.bf16.msra.mxu0 %v611_v7 }
  0x2a   : > { %384 = vmatpush.bf16.msra.mxu1 %v619_v8  ;;  %v415_v39 = vadd.f32 %v687_v26, %v414_v36 }
  0x2c   : > { %v417_v42 = vsel %vm416_vm1, %v687_v26, %v415_v39 }
  0x2d   : > { %372 = vmatpush.bf16.msra.mxu0 %v610_v9 }
  0x2e   : > { %385 = vmatpush.bf16.msra.mxu1 %v618_v10 }
  0x31   : > { %373 = vmatpush.bf16.msra.mxu0 %v609_v11 }
  0x32   : > { %386 = vmatpush.bf16.msra.mxu1 %v617_v12 }
  0x35   : > { %374 = vmatpush.bf16.msra.mxu0 %v608_v13 }
  0x36   : > { %387 = vmatpush.bf16.msra.mxu1 %v616_v14 }
  0x39   : > { %375 = vmatpush.bf16.msra.mxu0 %v607_v15 }
  0x3a   : > { %388 = vmatpush.bf16.msra.mxu1 %v615_v16 }
  0x3c   : > { %376 = vmatmul.bf16.vlgmr.msra.gmra.mxu0 %v268_v17 }
  0x3d   : > { %389 = vmatmul.bf16.vlgmr.msra.gmra.mxu1 %v269_v18 }
  0xb9   : > { %v377_v20 = vpop.f32.mrf.mxu0 }
  0xba   : > { %v390_v22 = vpop.f32.mrf.mxu1 }
  0xbb   : > { %v391_v24 = vadd.f32 %v390_v22, %v377_v20 }
  0xbd   : > { %v394_v25 = vadd.f32 %v391_v24, %v233_v21 }
  0xbf   : > { %395 = vst [vmem:[#allocation2] sm:$0x3] %v394_v25 }
  0xc1   : > { %v379_v27 = vpop.f32.mrf.mxu0 }
  0xc2   : > { %v392_v28 = vpop.f32.mrf.mxu1 }
  0xc6   : > { %v399_v31 = vld [vmem:[#allocation2] sm:$0x3] }
  0xc7   : > { %v402_v32 = vadd.f32 %v683_v29, %v399_v31 }
  0xc9   : > { %v404_v34 = vsel %vm403_vm0, %v402_v32, 0.0 }
  0xca   : > { %v405_v35 = vrot.slane %v404_v34, 4 }
  0xcc   : > { %v406_v37 = vadd.f32 %v405_v35, %v404_v34 }
  0xce   : > { %v407_v38 = vrot.slane %v406_v37, 2 }
  0xd0   : > { %v408_v40 = vadd.f32 %v407_v38, %v406_v37 }
  0xd2   : > { %v409_v41 = vrot.slane %v408_v40, 1 }
  0xd4   : > { %v410_v43 = vadd.f32 %v409_v41, %v408_v40 }
  0xd6   : > { %v418_v44 = vmul.f32 %v417_v42, %v410_v43 }
  0xd8   : > { %v419_v45 = vsub.f32 %v402_v32, %v418_v44 }
  0xda   : > { %v420_v46 = vmul.f32 %v419_v45, %v419_v45 }
  0xdc   : > { %v421_v47 = vsel %vm403_vm0, %v420_v46, 0.0 }
  0xdd   : > { %v422_v48 = vrot.slane %v421_v47, 4 }
  0xdf   : > { %v423_v49 = vadd.f32 %v422_v48, %v421_v47 }
  0xe1   : > { %v424_v50 = vrot.slane %v423_v49, 2 }
  0xe3   : > { %v425_v51 = vadd.f32 %v424_v50, %v423_v49 }
  0xe5   : > { %v426_v52 = vrot.slane %v425_v51, 1 }
  0xe7   : > { %v427_v53 = vadd.f32 %v426_v52, %v425_v51 }
  0xe9   : > { %v428_v54 = vmul.f32 %v427_v53, %v417_v42 }
  0xeb   : > { %v429_v55 = vadd.f32 1e-05, %v428_v54 }
  0xed   : > { %688 = vrsqrt.f32 %v429_v55  ;;  %vm436_vm3 = vweird.f32 %v429_v55 }
  0xf3   : > { %v689_v56 = vpop.eup %688 }
  0xf4   : > { %v431_v57 = vmul.f32 %v689_v56, %v429_v55  ;;  %vm437_vm2 = vweird.f32 %v689_v56 }
  0xf5   : > { %vm438_vm4 = vmor %vm436_vm3, %vm437_vm2 }
  0xf6   : > { %v432_v58 = vmul.f32 %v689_v56, %v431_v57 }
  0xf8   : > { %v433_v59 = vmul.f32 0.5, %v432_v58 }
  0xfa   : > { %v434_v60 = vsub.f32 1.5, %v433_v59 }
  0xfc   : > { %v435_v61 = vmul.f32 %v689_v56, %v434_v60 }
  0xfe   : > { %v439_v63 = vsel %vm438_vm4, %v689_v56, %v435_v61 }
  0xff   : > { %v440_v0 = vmul.f32 %v439_v63, %v419_v45 }
 0x101   : > { %v443_v2 = vmul.f32 %v684_v62, %v440_v0 }
 0x103   : > { %v446_v3 = vadd.f32 %v685_v1, %v443_v2 }
 0x105   : > { %v447_v4 = vmax.f32 %v446_v3, 0.0 }
 0x107   : > { %v448_v5 = vpack.c.bf16 %v447_v4, %v447_v4 }
 0x109   : > { %449 = vst [vmem:[%s222_s30] sm:$0x1] %v448_v5 }
 0x10a PF: > { %s16_s17 = sadd.s32 1, %s770_s17   ;;  %s926_s12 = smov %s754_s13 }
 0x10b   : > { %p13_p0 = scmp.ge.s32.totalorder %s16_s17, 4   ;;  %s927_s13 = smov %s758_s14 }
 0x10c   : > { %s928_s14 = smov %s846_s24  ;;  %s929_s15 = smov %s766_s16 }
 0x10d   : > { %s930_s16 = smov %s932_s19  ;;  %15 = sbr.rel (!%p13_p0) target bundleno = 4 (0x4), region = 84 }
 0x112   :  { %467 = vsyncpa [#allocation4], 1 }
 0x113   :  { %469 = vsyncpa [#allocation4 + $0x1], 1 }

// kernel: imagenet_shallow_mlp.7
= control target key start
LH: loop header
LB: loop body
LE: loop exit
PB: predicated region body
PF: predicated region fallthrough
CT: control target
= control target key end

     0   :  { %8 = vsyncpa [#allocation4], 0  ;;  %s1692_s0 = inlined_call_operand.vmem [shape: bf16[2,256], index: 0, kind: input, shape index: {}]   ;;  %s1693_s1 = inlined_call_operand.hbm [shape: bf16[256,1024], index: 1, kind: input, shape index: {}]   ;;  %s1694_s2 = inlined_call_operand.vmem [shape: f32[1,1024], index: 2, kind: input, shape index: {}]   ;;  %s1695_s3 = inlined_call_operand.hbm [shape: f32[2,1024], index: 3, kind: output, shape index: {}]  }
   0x1   :  { %10 = vsyncpa [#allocation4 + $0x1], 0 }
   0x2   :  { %11 = vsyncpa [#allocation5], 0 }
   0x3   :  { %13 = vsyncpa [#allocation5 + $0x1], 0  ;;  %s1418_s12 = smov 0   ;;  %s1420_s13 = smov 0  }
   0x4   :  { %s1422_s14 = smov 0   ;;  %s1424_s15 = smov 0  }
   0x5   :  { %s1426_s16 = smov 0   ;;  %s1428_s17 = smov 0  }
   0x6 LB: > { %s878_s18 = sadd.s32 4294967295, %s1393_s17   ;;  %s879_s19 = sadd.s32 4294967294, %s1393_s17   ;;  %s1393_s17 = sphi %s1428_s17, %s19_s17   ;;  %s1389_s16 = sphi %s1426_s16, %s1704_s16   ;;  %s1385_s15 = sphi %s1424_s15, %s1703_s15   ;;  %s1381_s14 = sphi %s1422_s14, %s1702_s14   ;;  %s1377_s13 = sphi %s1420_s13, %s1701_s13   ;;  %s1373_s12 = sphi %s1418_s12, %s1700_s12  }
   0x7   : > { %s31_s20 = sadd.s32 1, %s1389_s16  ;;  %s61_s21 = sadd.s32 1, %s1381_s14 }
   0x8   : > { %p33_p0 = scmp.ge.s32.totalorder %s31_s20, 2  ;;  %p68_p1 = scmp.ne.s32.totalorder %s1381_s14, %s1377_s13 }
   0x9   : > { %p69_p2 = scmp.eq.s32.totalorder %s1393_s17, 0  ;;  %p74_p3 = scmp.ne.s32.totalorder %s1377_s13, %s1373_s12 }
   0xa   : > { %s1706_s20 = smov (%p33_p0, %s31_s20), 0  ;;  %p75_p5 = scmp.eq.s32.totalorder %s878_s18, 0 }
   0xb   : > { %p1459_p4 = por %p69_p2, %p68_p1  ;;  %s57_s23 = ssub.s32 %s1389_s16, %s1706_s20 }
   0xc   : > { %p124_p6 = scmp.eq.s32.totalorder %s878_s18, 1  ;;  %p59_p7 = scmp.eq.s32.totalorder %s57_s23, 0 }
   0xd   : > { %p1465_p8 = por %p75_p5, %p74_p3  ;;  %p130_p10 = scmp.eq.s32.totalorder %s879_s19, 1 }
   0xe   : > { %p1469_p9 = por %p124_p6, %p68_p1  ;;  %p881_p12 = scmp.ge.s32.totalorder %s1393_s17, 2 }
   0xf   : > { %s1474_s26 = scalar_select %p59_p7, %s1381_s14, %s61_s21  }
  0x10   : > { %p1476_p11 = por %p130_p10, %p74_p3  ;;  %p1228_p13 = scmp.lt.s32.totalorder %s1393_s17, 2 }
  0x11   : > { %s153_s28 = sand.u32 1, %s1381_s14   ;;  %s1150_s30 = sshll.u32 %s1389_s16, 4 }
  0x12   : > { %s882_s29 = sshll.u32 %s153_s28, 9  ;;  %s165_s6 = scalar_lea.hbm %s1693_s1, %s1150_s30 }
  0x13   : > { %s157_s7 = scalar_lea.vmem [#allocation3], %s882_s29  ;;  %s166_s9 = sshll.u32 %s165_s6, 4  ;;  %s167_s9 = int_to_ptr.hbm [resolvable:$true] %s166_s9 }
  0x14   : > { %s168_s8 = sshll.u32 %s157_s7, 4  ;;  %p1221_p0 = pnand %p1228_p13, %p1459_p4  ;;  %s169_s8 = int_to_ptr.vmem [resolvable:$true] %s168_s8 }
  0x15   : > { %s154_s10 = scalar_lea.sflag [#allocation4], %s153_s28  ;;  %s1395_s11 = smov 512  }
  0x16   : > { %s1396_s18 = smov 256   ;;  %s1397_s19 = smov 16  }
  0x17   : > { %1223 = dma.hbm_to_vmem [thread:$0]  (!%p1221_p0), %s167_s9, 8192, %s169_s8, %s154_s10, %s1395_s11, %s1396_s18, %s1397_s19  }
  0x18   : > { %p885_p1 = scmp.ge.s32.totalorder %s1393_s17, 1  ;;  %p184_p2 = scmp.lt.s32.totalorder %s1393_s17, 3 }
  0x1a   : > { %p185_p3 = pnand %p885_p1, %p184_p2 }
  0x1b   : > { %s1492_s21 = sand.u32 (!%p185_p3), 1, %s1377_s13  }
  0x1c   : > { %188 = sbr.rel (%p185_p3) target bundleno = 246 (0xf6), region = 32  ;;  %s886_s23 = sshll.u32 (!%p185_p3), %s1492_s21, 9 }
  0x1d   : > { %s191_s29 = scalar_lea.sflag (!%p185_p3), [#allocation4], %s1492_s21  ;;  %s1496_s30 = scalar_lea.vmem (!%p185_p3), [#allocation3], %s886_s23 }
  0x21   : > { %1364 = dma.done.wait (%p1465_p8), %s191_s29, 8192  }
  0x22   : > { %1366 = vsyncadd (%p1465_p8), %s191_s29, 4294959104  ;;  %v1003_v0 = vld [vmem:[%s1496_s30 + $0xe0] sm:$0xf]  ;;  %v1181_v1 = vld [vmem:[%s1496_s30 + $0xec] sm:$0xf0]  ;;  %s888_s28 = sshll.u32 %s1385_s15, 2 }
  0x23   : > { %v1131_v2 = vld [vmem:[%s1496_s30 + $0x1e0] sm:$0xf]  ;;  %v1004_v3 = vor.u32 %v1181_v1, %v1003_v0  ;;  %v1213_v4 = vld [vmem:[%s1496_s30 + $0x1ec] sm:$0xf0]  ;;  %v1179_v5 = vld [vmem:[%s1496_s30 + $0xe4] sm:$0xf] }
  0x24   : > { %v1005_v6 = vld [vmem:[%s1496_s30 + $0xf0] sm:$0xf0]  ;;  %v1132_v7 = vor.u32 %v1213_v4, %v1131_v2  ;;  %v1211_v9 = vld [vmem:[%s1496_s30 + $0x1e4] sm:$0xf]  ;;  %v987_v11 = vld [vmem:[%s1496_s30 + $0xc0] sm:$0xf] }
  0x25   : > { %v1008_v8 = vor.u32 %v1179_v5, %v1005_v6  ;;  %v1133_v10 = vld [vmem:[%s1496_s30 + $0x1f0] sm:$0xf0]  ;;  %631 = vmatpush.bf16.msra.mxu0 %v1004_v3  ;;  %v1177_v13 = vld [vmem:[%s1496_s30 + $0xcc] sm:$0xf0]  ;;  %v1115_v14 = vld [vmem:[%s1496_s30 + $0x1c0] sm:$0xf] }
  0x26   : > { %v1136_v12 = vor.u32 %v1211_v9, %v1133_v10  ;;  %v1209_v15 = vld [vmem:[%s1496_s30 + $0x1cc] sm:$0xf0]  ;;  %644 = vmatpush.bf16.msra.mxu1 %v1132_v7  ;;  %v988_v16 = vor.u32 %v1177_v13, %v987_v11  ;;  %v1175_v18 = vld [vmem:[%s1496_s30 + $0xc4] sm:$0xf]  ;;  %v989_v19 = vld [vmem:[%s1496_s30 + $0xd0] sm:$0xf0] }
  0x27   : > { %657 = vmatpush.bf16.msra.mxu2 %v1008_v8  ;;  %v1116_v17 = vor.u32 %v1209_v15, %v1115_v14  ;;  %v1207_v20 = vld [vmem:[%s1496_s30 + $0x1c4] sm:$0xf]  ;;  %v992_v21 = vor.u32 %v1175_v18, %v989_v19  ;;  %v1117_v22 = vld [vmem:[%s1496_s30 + $0x1d0] sm:$0xf0]  ;;  %v971_v23 = vld [vmem:[%s1496_s30 + $0xa0] sm:$0xf] }
  0x28   : > { %670 = vmatpush.bf16.msra.mxu3 %v1136_v12  ;;  %v1173_v24 = vld [vmem:[%s1496_s30 + $0xac] sm:$0xf0]  ;;  %v1120_v25 = vor.u32 %v1207_v20, %v1117_v22  ;;  %v1099_v26 = vld [vmem:[%s1496_s30 + $0x1a0] sm:$0xf]  ;;  %v1171_v28 = vld [vmem:[%s1496_s30 + $0xa4] sm:$0xf] }
  0x29   : > { %v1205_v27 = vld [vmem:[%s1496_s30 + $0x1ac] sm:$0xf0]  ;;  %632 = vmatpush.bf16.msra.mxu0 %v988_v16  ;;  %v972_v29 = vor.u32 %v1173_v24, %v971_v23  ;;  %v973_v30 = vld [vmem:[%s1496_s30 + $0xb0] sm:$0xf0]  ;;  %v1203_v31 = vld [vmem:[%s1496_s30 + $0x1a4] sm:$0xf] }
  0x2a   : > { %v1101_v32 = vld [vmem:[%s1496_s30 + $0x1b0] sm:$0xf0]  ;;  %645 = vmatpush.bf16.msra.mxu1 %v1116_v17  ;;  %v1100_v33 = vor.u32 %v1205_v27, %v1099_v26  ;;  %v976_v34 = vor.u32 %v1171_v28, %v973_v30  ;;  %v955_v35 = vld [vmem:[%s1496_s30 + $0x80] sm:$0xf]  ;;  %v1169_v36 = vld [vmem:[%s1496_s30 + $0x8c] sm:$0xf0] }
  0x2b   : > { %658 = vmatpush.bf16.msra.mxu2 %v992_v21  ;;  %v1083_v37 = vld [vmem:[%s1496_s30 + $0x180] sm:$0xf]  ;;  %v1104_v38 = vor.u32 %v1203_v31, %v1101_v32  ;;  %v1201_v39 = vld [vmem:[%s1496_s30 + $0x18c] sm:$0xf0]  ;;  %v1167_v40 = vld [vmem:[%s1496_s30 + $0x84] sm:$0xf]  ;;  %v956_v44 = vor.u32 %v1169_v36, %v955_v35 }
  0x2c   : > { %671 = vmatpush.bf16.msra.mxu3 %v1120_v25  ;;  %v957_v41 = vld [vmem:[%s1496_s30 + $0x90] sm:$0xf0]  ;;  %v1199_v42 = vld [vmem:[%s1496_s30 + $0x184] sm:$0xf]  ;;  %v1084_v45 = vor.u32 %v1201_v39, %v1083_v37  ;;  %v939_v47 = vld [vmem:[%s1496_s30 + $0x60] sm:$0xf] }
  0x2d   : > { %v1085_v43 = vld [vmem:[%s1496_s30 + $0x190] sm:$0xf0]  ;;  %633 = vmatpush.bf16.msra.mxu0 %v972_v29  ;;  %v960_v46 = vor.u32 %v1167_v40, %v957_v41  ;;  %v1165_v48 = vld [vmem:[%s1496_s30 + $0x6c] sm:$0xf0]  ;;  %v1067_v49 = vld [vmem:[%s1496_s30 + $0x160] sm:$0xf] }
  0x2e   : > { %646 = vmatpush.bf16.msra.mxu1 %v1100_v33  ;;  %v1088_v50 = vor.u32 %v1199_v42, %v1085_v43  ;;  %v1197_v51 = vld [vmem:[%s1496_s30 + $0x16c] sm:$0xf0]  ;;  %v1163_v52 = vld [vmem:[%s1496_s30 + $0x64] sm:$0xf]  ;;  %v941_v53 = vld [vmem:[%s1496_s30 + $0x70] sm:$0xf0]  ;;  %v940_v56 = vor.u32 %v1165_v48, %v939_v47 }
  0x2f   : > { %659 = vmatpush.bf16.msra.mxu2 %v976_v34  ;;  %v1195_v54 = vld [vmem:[%s1496_s30 + $0x164] sm:$0xf]  ;;  %v1069_v55 = vld [vmem:[%s1496_s30 + $0x170] sm:$0xf0]  ;;  %v1068_v57 = vor.u32 %v1197_v51, %v1067_v49  ;;  %v944_v58 = vor.u32 %v1163_v52, %v941_v53  ;;  %v923_v59 = vld [vmem:[%s1496_s30 + $0x40] sm:$0xf] }
  0x30   : > { %672 = vmatpush.bf16.msra.mxu3 %v1104_v38  ;;  %v1161_v60 = vld [vmem:[%s1496_s30 + $0x4c] sm:$0xf0]  ;;  %v1051_v61 = vld [vmem:[%s1496_s30 + $0x140] sm:$0xf]  ;;  %v1072_v62 = vor.u32 %v1195_v54, %v1069_v55  ;;  %v1159_v0 = vld [vmem:[%s1496_s30 + $0x44] sm:$0xf] }
  0x31   : > { %634 = vmatpush.bf16.msra.mxu0 %v956_v44  ;;  %v1193_v63 = vld [vmem:[%s1496_s30 + $0x14c] sm:$0xf0]  ;;  %v925_v1 = vld [vmem:[%s1496_s30 + $0x50] sm:$0xf0]  ;;  %v1191_v2 = vld [vmem:[%s1496_s30 + $0x144] sm:$0xf]  ;;  %v924_v4 = vor.u32 %v1161_v60, %v923_v59 }
  0x32   : > { %647 = vmatpush.bf16.msra.mxu1 %v1084_v45  ;;  %v1053_v3 = vld [vmem:[%s1496_s30 + $0x150] sm:$0xf0]  ;;  %v1052_v5 = vor.u32 %v1193_v63, %v1051_v61  ;;  %v928_v6 = vor.u32 %v1159_v0, %v925_v1  ;;  %v907_v7 = vld [vmem:[%s1496_s30 + $0x20] sm:$0xf]  ;;  %v1157_v8 = vld [vmem:[%s1496_s30 + $0x2c] sm:$0xf0] }
  0x33   : > { %660 = vmatpush.bf16.msra.mxu2 %v960_v46  ;;  %v1035_v9 = vld [vmem:[%s1496_s30 + $0x120] sm:$0xf]  ;;  %v1056_v10 = vor.u32 %v1191_v2, %v1053_v3  ;;  %v1189_v11 = vld [vmem:[%s1496_s30 + $0x12c] sm:$0xf0]  ;;  %v1155_v12 = vld [vmem:[%s1496_s30 + $0x24] sm:$0xf]  ;;  %v908_v17 = vor.u32 %v1157_v8, %v907_v7 }
  0x34   : > { %673 = vmatpush.bf16.msra.mxu3 %v1088_v50  ;;  %v909_v13 = vld [vmem:[%s1496_s30 + $0x30] sm:$0xf0]  ;;  %v1187_v14 = vld [vmem:[%s1496_s30 + $0x124] sm:$0xf]  ;;  %v891_v16 = vld [vmem:[%s1496_s30] sm:$0xf]  ;;  %v1036_v21 = vor.u32 %v1189_v11, %v1035_v9 }
  0x35   : > { %635 = vmatpush.bf16.msra.mxu0 %v940_v56  ;;  %v1037_v15 = vld [vmem:[%s1496_s30 + $0x130] sm:$0xf0]  ;;  %v1153_v18 = vld [vmem:[%s1496_s30 + $0xc] sm:$0xf0]  ;;  %v1019_v19 = vld [vmem:[%s1496_s30 + $0x100] sm:$0xf]  ;;  %v912_v22 = vor.u32 %v1155_v12, %v909_v13 }
  0x36   : > { %648 = vmatpush.bf16.msra.mxu1 %v1068_v57  ;;  %v1185_v20 = vld [vmem:[%s1496_s30 + $0x10c] sm:$0xf0]  ;;  %v1151_v23 = vld [vmem:[%s1496_s30 + $0x4] sm:$0xf]  ;;  %v893_v24 = vld [vmem:[%s1496_s30 + $0x10] sm:$0xf0]  ;;  %v1040_v26 = vor.u32 %v1187_v14, %v1037_v15  ;;  %v892_v33 = vor.u32 %v1153_v18, %v891_v16 }
  0x37   : > { %661 = vmatpush.bf16.msra.mxu2 %v944_v58  ;;  %v1183_v25 = vld [vmem:[%s1496_s30 + $0x104] sm:$0xf]  ;;  %v1021_v27 = vld [vmem:[%s1496_s30 + $0x110] sm:$0xf0]  ;;  %v1011_v28 = vld [vmem:[%s1496_s30 + $0xe8] sm:$0xf]  ;;  %v1020_v36 = vor.u32 %v1185_v20, %v1019_v19  ;;  %v896_v37 = vor.u32 %v1151_v23, %v893_v24 }
  0x38   : > { %674 = vmatpush.bf16.msra.mxu3 %v1072_v62  ;;  %v1182_v29 = vld [vmem:[%s1496_s30 + $0xf4] sm:$0xf0]  ;;  %v1139_v30 = vld [vmem:[%s1496_s30 + $0x1e8] sm:$0xf]  ;;  %v1180_v34 = vld [vmem:[%s1496_s30 + $0xec] sm:$0xf]  ;;  %v1024_v40 = vor.u32 %v1183_v25, %v1021_v27 }
  0x39   : > { %636 = vmatpush.bf16.msra.mxu0 %v924_v4  ;;  %v1214_v31 = vld [vmem:[%s1496_s30 + $0x1f4] sm:$0xf0]  ;;  %v1013_v35 = vld [vmem:[%s1496_s30 + $0xf8] sm:$0xf0]  ;;  %v1212_v38 = vld [vmem:[%s1496_s30 + $0x1ec] sm:$0xf]  ;;  %v1012_v41 = vor.u32 %v1182_v29, %v1011_v28 }
  0x3a   : > { %649 = vmatpush.bf16.msra.mxu1 %v1052_v5  ;;  %v239_v32 = vld [vmem:[%s1692_s0] sm:$0x3]  ;;  %v1141_v39 = vld [vmem:[%s1496_s30 + $0x1f8] sm:$0xf0]  ;;  %v1140_v42 = vor.u32 %v1214_v31, %v1139_v30  ;;  %v1016_v43 = vor.u32 %v1180_v34, %v1013_v35  ;;  %v995_v44 = vld [vmem:[%s1496_s30 + $0xc8] sm:$0xf] }
  0x3b   : > { %662 = vmatpush.bf16.msra.mxu2 %v928_v6  ;;  %306 = vst [vmem:[#allocation1] ss:$9 sm:$0xff] %v239_v32  ;;  %v1178_v45 = vld [vmem:[%s1496_s30 + $0xd4] sm:$0xf0]  ;;  %v1123_v46 = vld [vmem:[%s1496_s30 + $0x1c8] sm:$0xf]  ;;  %v1144_v47 = vor.u32 %v1212_v38, %v1141_v39 }
  0x3c   : > { %675 = vmatpush.bf16.msra.mxu3 %v1056_v10  ;;  %v1210_v48 = vld [vmem:[%s1496_s30 + $0x1d4] sm:$0xf0]  ;;  %v1176_v49 = vld [vmem:[%s1496_s30 + $0xcc] sm:$0xf]  ;;  %v997_v50 = vld [vmem:[%s1496_s30 + $0xd8] sm:$0xf0]  ;;  %v996_v53 = vor.u32 %v1178_v45, %v995_v44 }
  0x3d   : > { %637 = vmatpush.bf16.msra.mxu0 %v908_v17  ;;  %v1208_v51 = vld [vmem:[%s1496_s30 + $0x1cc] sm:$0xf]  ;;  %v1125_v52 = vld [vmem:[%s1496_s30 + $0x1d8] sm:$0xf0]  ;;  %v979_v54 = vld [vmem:[%s1496_s30 + $0xa8] sm:$0xf]  ;;  %v1124_v56 = vor.u32 %v1210_v48, %v1123_v46  ;;  %v1000_v57 = vor.u32 %v1176_v49, %v997_v50 }
  0x3e   : > { %650 = vmatpush.bf16.msra.mxu1 %v1036_v21  ;;  %v1174_v55 = vld [vmem:[%s1496_s30 + $0xb4] sm:$0xf0]  ;;  %v1107_v60 = vld [vmem:[%s1496_s30 + $0x1a8] sm:$0xf]  ;;  %v1128_v61 = vor.u32 %v1208_v51, %v1125_v52  ;;  %v1172_v63 = vld [vmem:[%s1496_s30 + $0xac] sm:$0xf] }
  0x3f   : > { %663 = vmatpush.bf16.msra.mxu2 %v912_v22  ;;  %v1206_v62 = vld [vmem:[%s1496_s30 + $0x1b4] sm:$0xf0]  ;;  %v981_v0 = vld [vmem:[%s1496_s30 + $0xb8] sm:$0xf0]  ;;  %v1204_v1 = vld [vmem:[%s1496_s30 + $0x1ac] sm:$0xf]  ;;  %v980_v3 = vor.u32 %v1174_v55, %v979_v54 }
  0x40   : > { %676 = vmatpush.bf16.msra.mxu3 %v1040_v26  ;;  %v1109_v2 = vld [vmem:[%s1496_s30 + $0x1b8] sm:$0xf0]  ;;  %v1108_v4 = vor.u32 %v1206_v62, %v1107_v60  ;;  %v984_v5 = vor.u32 %v1172_v63, %v981_v0  ;;  %v963_v6 = vld [vmem:[%s1496_s30 + $0x88] sm:$0xf]  ;;  %v1170_v7 = vld [vmem:[%s1496_s30 + $0x94] sm:$0xf0] }
  0x41   : > { %638 = vmatpush.bf16.msra.mxu0 %v892_v33  ;;  %v1091_v8 = vld [vmem:[%s1496_s30 + $0x188] sm:$0xf]  ;;  %v1112_v9 = vor.u32 %v1204_v1, %v1109_v2  ;;  %v1202_v10 = vld [vmem:[%s1496_s30 + $0x194] sm:$0xf0]  ;;  %v1168_v11 = vld [vmem:[%s1496_s30 + $0x8c] sm:$0xf]  ;;  %v964_v15 = vor.u32 %v1170_v7, %v963_v6 }
  0x42   : > { %651 = vmatpush.bf16.msra.mxu1 %v1020_v36  ;;  %v1587_v58 = vld [vmem:[#allocation1] sm:$0xff]  ;;  %v1589_v59 = vld [vmem:[#allocation1 + $0x9] sm:$0xff]  ;;  %v1200_v13 = vld [vmem:[%s1496_s30 + $0x18c] sm:$0xf]  ;;  %v1092_v16 = vor.u32 %v1202_v10, %v1091_v8  ;;  %p225_p4 = scmp.lt.s32.totalorder %s888_s28, 7  ;;  %vm744_vm0 = vcmask 1045508  }
  0x43   : > { %664 = vmatpush.bf16.msra.mxu2 %v896_v37  ;;  %v965_v12 = vld [vmem:[%s1496_s30 + $0x98] sm:$0xf0]  ;;  %v947_v18 = vld [vmem:[%s1496_s30 + $0x68] sm:$0xf]  ;;  %v1166_v19 = vld [vmem:[%s1496_s30 + $0x74] sm:$0xf0] }
  0x44   : > { %677 = vmatpush.bf16.msra.mxu3 %v1024_v40  ;;  %639 = vmatmul.bf16.vlgmr.msra.gmra.mxu0 %v1587_v58  ;;  %v1093_v14 = vld [vmem:[%s1496_s30 + $0x198] sm:$0xf0]  ;;  %v968_v17 = vor.u32 %v1168_v11, %v965_v12  ;;  %v1075_v20 = vld [vmem:[%s1496_s30 + $0x168] sm:$0xf]  ;;  %v1198_v22 = vld [vmem:[%s1496_s30 + $0x174] sm:$0xf0]  ;;  %v948_v27 = vor.u32 %v1166_v19, %v947_v18 }
  0x45   : > { %683 = vmatpush.bf16.msrb.mxu0 %v1012_v41  ;;  %652 = vmatmul.bf16.vlgmr.msra.gmra.mxu1 %v1589_v59  ;;  %v1096_v21 = vor.u32 %v1200_v13, %v1093_v14  ;;  %v1164_v23 = vld [vmem:[%s1496_s30 + $0x6c] sm:$0xf]  ;;  %v949_v24 = vld [vmem:[%s1496_s30 + $0x78] sm:$0xf0]  ;;  %v1076_v28 = vor.u32 %v1198_v22, %v1075_v20  ;;  %v931_v30 = vld [vmem:[%s1496_s30 + $0x48] sm:$0xf] }
  0x46   : > { %696 = vmatpush.bf16.msrb.mxu1 %v1140_v42  ;;  %665 = vmatmul.bf16.vlgmr.msra.gmra.mxu2 %v1587_v58  ;;  %v1196_v25 = vld [vmem:[%s1496_s30 + $0x16c] sm:$0xf]  ;;  %v1077_v26 = vld [vmem:[%s1496_s30 + $0x178] sm:$0xf0]  ;;  %v952_v29 = vor.u32 %v1164_v23, %v949_v24  ;;  %v1162_v31 = vld [vmem:[%s1496_s30 + $0x54] sm:$0xf0] }
  0x47   : > { %709 = vmatpush.bf16.msrb.mxu2 %v1016_v43  ;;  %678 = vmatmul.bf16.vlgmr.msra.gmra.mxu3 %v1589_v59  ;;  %v1059_v32 = vld [vmem:[%s1496_s30 + $0x148] sm:$0xf]  ;;  %v1080_v33 = vor.u32 %v1196_v25, %v1077_v26  ;;  %v1194_v34 = vld [vmem:[%s1496_s30 + $0x154] sm:$0xf0]  ;;  %v1160_v35 = vld [vmem:[%s1496_s30 + $0x4c] sm:$0xf]  ;;  %v932_v39 = vor.u32 %v1162_v31, %v931_v30 }
  0x48   : > { %722 = vmatpush.bf16.msrb.mxu3 %v1144_v47  ;;  %v933_v36 = vld [vmem:[%s1496_s30 + $0x58] sm:$0xf0]  ;;  %v1192_v37 = vld [vmem:[%s1496_s30 + $0x14c] sm:$0xf]  ;;  %v1060_v40 = vor.u32 %v1194_v34, %v1059_v32  ;;  %v915_v42 = vld [vmem:[%s1496_s30 + $0x28] sm:$0xf] }
  0x49   : > { %684 = vmatpush.bf16.msrb.mxu0 %v996_v53  ;;  %v1061_v38 = vld [vmem:[%s1496_s30 + $0x158] sm:$0xf0]  ;;  %v936_v41 = vor.u32 %v1160_v35, %v933_v36  ;;  %v1158_v43 = vld [vmem:[%s1496_s30 + $0x34] sm:$0xf0]  ;;  %v1043_v44 = vld [vmem:[%s1496_s30 + $0x128] sm:$0xf] }
  0x4a   : > { %697 = vmatpush.bf16.msrb.mxu1 %v1124_v56  ;;  %v1064_v45 = vor.u32 %v1192_v37, %v1061_v38  ;;  %v1190_v46 = vld [vmem:[%s1496_s30 + $0x134] sm:$0xf0]  ;;  %v1156_v47 = vld [vmem:[%s1496_s30 + $0x2c] sm:$0xf]  ;;  %v917_v48 = vld [vmem:[%s1496_s30 + $0x38] sm:$0xf0]  ;;  %v916_v51 = vor.u32 %v1158_v43, %v915_v42 }
  0x4b   : > { %710 = vmatpush.bf16.msrb.mxu2 %v1000_v57  ;;  %v1188_v49 = vld [vmem:[%s1496_s30 + $0x12c] sm:$0xf]  ;;  %v1045_v50 = vld [vmem:[%s1496_s30 + $0x138] sm:$0xf0]  ;;  %v1044_v52 = vor.u32 %v1190_v46, %v1043_v44  ;;  %v920_v53 = vor.u32 %v1156_v47, %v917_v48  ;;  %v899_v54 = vld [vmem:[%s1496_s30 + $0x8] sm:$0xf] }
  0x4c   : > { %723 = vmatpush.bf16.msrb.mxu3 %v1128_v61  ;;  %v1154_v55 = vld [vmem:[%s1496_s30 + $0x14] sm:$0xf0]  ;;  %v1027_v56 = vld [vmem:[%s1496_s30 + $0x108] sm:$0xf]  ;;  %v1048_v57 = vor.u32 %v1188_v49, %v1045_v50  ;;  %v1152_v61 = vld [vmem:[%s1496_s30 + $0xc] sm:$0xf] }
  0x4d   : > { %685 = vmatpush.bf16.msrb.mxu0 %v980_v3  ;;  %v1186_v60 = vld [vmem:[%s1496_s30 + $0x114] sm:$0xf0]  ;;  %v901_v62 = vld [vmem:[%s1496_s30 + $0x18] sm:$0xf0]  ;;  %v1184_v63 = vld [vmem:[%s1496_s30 + $0x10c] sm:$0xf]  ;;  %v900_v1 = vor.u32 %v1154_v55, %v899_v54 }
  0x4e   : > { %698 = vmatpush.bf16.msrb.mxu1 %v1108_v4  ;;  %v1029_v0 = vld [vmem:[%s1496_s30 + $0x118] sm:$0xf0]  ;;  %v1028_v2 = vor.u32 %v1186_v60, %v1027_v56  ;;  %v904_v3 = vor.u32 %v1152_v61, %v901_v62  ;;  %s1708_s28 = smov (!%p225_p4, %s888_s28), 7  ;;  %s887_s7 = sshll.u32 %s1492_s21, 3  ;;  %vm742_vm1 = vcmask 1041408   ;;  %vm746_vm2 = vcmask 1043456  }
  0x4f   : > { %711 = vmatpush.bf16.msrb.mxu2 %v984_v5  ;;  %v1032_v4 = vor.u32 %v1184_v63, %v1029_v0  ;;  %s227_s6 = scalar_lea.vmem %s1694_s2, %s1708_s28  ;;  %s1215_s8 = sshll.u32 %s1385_s15, 3 }
  0x50   : > { %724 = vmatpush.bf16.msrb.mxu3 %v1112_v9  ;;  %s782_s11 = scalar_lea.hbm %s1695_s3, %s1215_s8  ;;  %s221_s15 = scalar_lea.vmem [#allocation6], %s887_s7 }
  0x51   : > { %686 = vmatpush.bf16.msrb.mxu0 %v964_v15  ;;  %s784_s18 = sshll.u32 %s221_s15, 4  ;;  %s786_s19 = sshll.u32 %s782_s11, 4  ;;  %s785_s18 = int_to_ptr.vmem [resolvable:$true] %s784_s18  ;;  %s787_s19 = int_to_ptr.hbm [resolvable:$true] %s786_s19 }
  0x52   : > { %699 = vmatpush.bf16.msrb.mxu1 %v1092_v16  ;;  %s771_s23 = scalar_lea.sflag [#allocation5], %s1492_s21  ;;  %s1325_s29 = sshra.s32 %s787_s19, 4  ;;  %s1326_s29 = int_to_ptr.hbm [resolvable:$true] %s1325_s29 }
  0x53   : > { %712 = vmatpush.bf16.msrb.mxu2 %v968_v17  ;;  %s1327_s30 = scalar_lea.hbm %s1326_s29, 8  ;;  %s1331_s28 = scalar_lea.hbm %s1695_s3, 16 }
  0x54   : > { %725 = vmatpush.bf16.msrb.mxu3 %v1096_v21  ;;  %p1328_p5 = scmp.ne.s32.totalorder %s1326_s29, %s1327_s30  ;;  %p1332_p8 = scmp.lt.s32.totalorder %s1326_s29, %s1695_s3 }
  0x55   : > { %687 = vmatpush.bf16.msrb.mxu0 %v948_v27  ;;  %p1333_p10 = scmp.lt.s32.totalorder %s1331_s28, %s1327_s30 }
  0x56   : > { %700 = vmatpush.bf16.msrb.mxu1 %v1076_v28  ;;  %p1329_p6 = pnand %p1328_p5, %p1469_p9 }
  0x57   : > { %713 = vmatpush.bf16.msrb.mxu2 %v952_v29  ;;  %p1334_p13 = por %p1333_p10, %p1332_p8 }
  0x58   : > { %726 = vmatpush.bf16.msrb.mxu3 %v1080_v33  ;;  %p1330_p7 = pneg %p1329_p6 }
  0x59   : > { %688 = vmatpush.bf16.msrb.mxu0 %v932_v39 }
  0x5a   : > { %701 = vmatpush.bf16.msrb.mxu1 %v1060_v40  ;;  %p1335_p0 = pnand %p1334_p13, %p1330_p7 }
  0x5b   : > { %714 = vmatpush.bf16.msrb.mxu2 %v936_v41 }
  0x5c   : > { %727 = vmatpush.bf16.msrb.mxu3 %v1064_v45 }
  0x5d   : > { %689 = vmatpush.bf16.msrb.mxu0 %v916_v51 }
  0x5e   : > { %702 = vmatpush.bf16.msrb.mxu1 %v1044_v52 }
  0x5f   : > { %715 = vmatpush.bf16.msrb.mxu2 %v920_v53 }
  0x60   : > { %728 = vmatpush.bf16.msrb.mxu3 %v1048_v57 }
  0x61   : > { %690 = vmatpush.bf16.msrb.mxu0 %v900_v1 }
  0x62   : > { %703 = vmatpush.bf16.msrb.mxu1 %v1028_v2 }
  0x63   : > { %716 = vmatpush.bf16.msrb.mxu2 %v904_v3 }
  0x64   : > { %729 = vmatpush.bf16.msrb.mxu3 %v1032_v4  ;;  %691 = vmatmul.bf16.vlgmr.msrb.gmra.mxu0 %v1587_v58 }
  0x65   : > { %704 = vmatmul.bf16.vlgmr.msrb.gmra.mxu1 %v1589_v59 }
  0x66   : > { %717 = vmatmul.bf16.vlgmr.msrb.gmra.mxu2 %v1587_v58  ;;  %v755_v58 = vld [vmem:[%s227_s6] sm:$0xf] }
  0x67   : > { %730 = vmatmul.bf16.vlgmr.msrb.gmra.mxu3 %v1589_v59  ;;  %v758_v13 = vperm.slane %v755_v58, 1  ;;  %v759_v15 = vperm.slane %v755_v58, 2  ;;  %v760_v16 = vperm.slane %v755_v58, 3  ;;  %v757_v18 = vperm.slane %v755_v58, 0 }
  0x69   : > { %v761_v19 = vrot.slane %v758_v13, 6  ;;  %v762_v21 = vrot.slane %v759_v15, 4  ;;  %v763_v22 = vrot.slane %v760_v16, 2 }
  0x6b   : > { %v764_v26 = vsel %vm742_vm1, %v757_v18, %v761_v19  ;;  %v765_v31 = vsel %vm744_vm0, %v762_v21, %v763_v22 }
  0x6c   : > { %v766_v34 = vsel %vm746_vm2, %v764_v26, %v765_v31 }
  0xc1   : > { %v640_v5 = vpop.f32.mrf.mxu0 }
  0xc2   : > { %v653_v6 = vpop.f32.mrf.mxu1 }
  0xc3   : > { %v654_v24 = vadd.f32 %v653_v6, %v640_v5 }
  0xc9   : > { %v666_v7 = vpop.f32.mrf.mxu2  ;;  %v642_v9 = vpop.f32.mrf.mxu0 }
  0xca   : > { %v679_v8 = vpop.f32.mrf.mxu3  ;;  %v655_v10 = vpop.f32.mrf.mxu1 }
  0xcb   : > { %v680_v17 = vadd.f32 %v679_v8, %v666_v7 }
  0xcd   : > { %v739_v25 = vrot.slane %v680_v17, 6 }
  0xcf   : > { %v743_v35 = vsel %vm742_vm1, %v654_v24, %v739_v25 }
  0xd1   : > { %v668_v11 = vpop.f32.mrf.mxu2 }
  0xd2   : > { %v681_v12 = vpop.f32.mrf.mxu3 }
  0xe1   : > { %v692_v59 = vpop.f32.mrf.mxu0 }
  0xe2   : > { %v705_v14 = vpop.f32.mrf.mxu1 }
  0xe3   : > { %v706_v20 = vadd.f32 %v705_v14, %v692_v59 }
  0xe5   : > { %v740_v29 = vrot.slane %v706_v20, 4 }
  0xe9   : > { %v718_v23 = vpop.f32.mrf.mxu2  ;;  %v694_v28 = vpop.f32.mrf.mxu0 }
  0xea   : > { %v731_v27 = vpop.f32.mrf.mxu3  ;;  %v707_v32 = vpop.f32.mrf.mxu1 }
  0xeb   : > { %v732_v30 = vadd.f32 %v731_v27, %v718_v23 }
  0xed   : > { %v741_v33 = vrot.slane %v732_v30, 2 }
  0xef   : > { %v745_v36 = vsel %vm744_vm0, %v740_v29, %v741_v33 }
  0xf0   : > { %v747_v37 = vsel %vm746_vm2, %v743_v35, %v745_v36 }
  0xf1   : > { %v768_v38 = vadd.f32 %v766_v34, %v747_v37  ;;  %v720_v39 = vpop.f32.mrf.mxu2 }
  0xf2   : > { %v733_v40 = vpop.f32.mrf.mxu3 }
  0xf3   : > { %769 = vst [vmem:[%s221_s15] sm:$0xff] %v768_v38 }
  0xf4   : > { %1338 = shalt.err (!%p1335_p0)
}
  0xf5   : > { %1218 = dma.vmem_to_hbm [thread:$0]  (%p1469_p9), %s785_s18, 128, %s787_s19, %s771_s23  }
  0xf6 PF: > { %s798_s21 = sand.u32 1, %s1373_s12   ;;  %p1225_p1 = pnand %p881_p12, %p1476_p11 }
  0xf7   : > { %s799_s6 = scalar_lea.sflag [#allocation5], %s798_s21 }
  0xf8   : > { %p1226_p2 = pneg %p1225_p1 }
  0xfa   : > { %1368 = dma.done.wait (%p1226_p2), %s799_s6, 128  }
  0xfb   : > { %1370 = vsyncadd (%p1226_p2), %s799_s6, 4294967168  ;;  %s19_s17 = sadd.s32 1, %s1393_s17   ;;  %s1700_s12 = smov %s1377_s13 }
  0xfc   : > { %p16_p3 = scmp.ge.s32.totalorder %s19_s17, 4   ;;  %s1701_s13 = smov %s1381_s14 }
  0xfd   : > { %s1702_s14 = smov %s1474_s26  ;;  %s1703_s15 = smov %s1389_s16 }
  0xfe   : > { %s1704_s16 = smov %s1706_s20  ;;  %18 = sbr.rel (!%p16_p3) target bundleno = 6 (0x6), region = 89 }
 0x103   :  { %805 = vsyncpa [#allocation4], 1 }
 0x104   :  { %807 = vsyncpa [#allocation4 + $0x1], 1 }
 0x105   :  { %808 = vsyncpa [#allocation5], 1 }
 0x106   :  { %810 = vsyncpa [#allocation5 + $0x1], 1 }

// kernel: imagenet_shallow_mlp.4
= control target key start
LH: loop header
LB: loop body
LE: loop exit
PB: predicated region body
PF: predicated region fallthrough
CT: control target
= control target key end

     0   :  { %8 = vsyncpa [#allocation4], 0  ;;  %s1699_s0 = inlined_call_operand.vmem [shape: f32[2,1024], index: 0, kind: input, shape index: {}]   ;;  %s1700_s1 = inlined_call_operand.hbm [shape: bf16[1024,256], index: 1, kind: input, shape index: {}]   ;;  %s1701_s2 = inlined_call_operand.vmem [shape: f32[3,256], index: 2, kind: input, shape index: {}]   ;;  %s1702_s3 = inlined_call_operand.vmem [shape: bf16[2,256], index: 3, kind: output, shape index: {}]  }
   0x1   :  { %10 = vsyncpa [#allocation4 + $0x1], 0  ;;  %s1525_s12 = smov 0   ;;  %s1527_s13 = smov 0  }
   0x2   :  { %s1529_s14 = smov 0   ;;  %s1531_s15 = smov 0  }
   0x3   :  { %s1533_s16 = smov 0   ;;  %s1535_s17 = smov 0  }
   0x4 LB: > { %s1020_s18 = sadd.s32 4294967295, %s1498_s17   ;;  %s28_s19 = sadd.s32 1, %s1494_s16  ;;  %s1498_s17 = sphi %s1535_s17, %s16_s17   ;;  %s1494_s16 = sphi %s1533_s16, %s1709_s16   ;;  %s1490_s15 = sphi %s1531_s15, %s1708_s15   ;;  %s1486_s14 = sphi %s1529_s14, %s1707_s14   ;;  %s1482_s13 = sphi %s1527_s13, %s1706_s13   ;;  %s1478_s12 = sphi %s1525_s12, %s1705_s12  }
   0x5   : > { %p30_p0 = scmp.ge.s32.totalorder %s28_s19, 2  ;;  %s58_s20 = sadd.s32 1, %s1486_s14 }
   0x6   : > { %p65_p1 = scmp.ne.s32.totalorder %s1486_s14, %s1482_s13  ;;  %p66_p2 = scmp.eq.s32.totalorder %s1498_s17, 0 }
   0x7   : > { %s1711_s19 = smov (%p30_p0, %s28_s19), 0  ;;  %p71_p4 = scmp.ne.s32.totalorder %s1482_s13, %s1478_s12 }
   0x8   : > { %p1561_p3 = por %p66_p2, %p65_p1  ;;  %s54_s22 = ssub.s32 %s1494_s16, %s1711_s19 }
   0x9   : > { %p72_p5 = scmp.eq.s32.totalorder %s1020_s18, 0  ;;  %p56_p6 = scmp.eq.s32.totalorder %s54_s22, 0 }
   0xa   : > { %p1357_p8 = scmp.lt.s32.totalorder %s1498_s17, 2  ;;  %s150_s25 = sand.u32 1, %s1486_s14  }
   0xb   : > { %p1568_p7 = por %p72_p5, %p71_p4  ;;  %s1025_s26 = sshll.u32 %s1494_s16, 2 }
   0xc   : > { %s1574_s24 = scalar_select %p56_p6, %s1486_s14, %s58_s20  }
   0xd   : > { %s1024_s27 = sshll.u32 %s150_s25, 9  ;;  %s161_s30 = scalar_lea.hbm %s1700_s1, %s1025_s26 }
   0xe   : > { %s162_s4 = sshll.u32 %s161_s30, 4  ;;  %s154_s5 = scalar_lea.vmem [#allocation3], %s1024_s27  ;;  %s163_s4 = int_to_ptr.hbm [resolvable:$true] %s162_s4 }
   0xf   : > { %s164_s6 = sshll.u32 %s154_s5, 4  ;;  %p1354_p9 = pnand %p1357_p8, %p1561_p3  ;;  %s165_s6 = int_to_ptr.vmem [resolvable:$true] %s164_s6 }
  0x10   : > { %p1026_p10 = scmp.ge.s32.totalorder %s1498_s17, 1  ;;  %s151_s7 = scalar_lea.sflag [#allocation4], %s150_s25 }
  0x11   : > { %s1500_s8 = smov 128   ;;  %s1501_s9 = smov 64  }
  0x12   : > { %s1502_s10 = smov 4   ;;  %p179_p11 = scmp.lt.s32.totalorder %s1498_s17, 3 }
  0x13   : > { %1356 = dma.hbm_to_vmem [thread:$0]  (!%p1354_p9), %s163_s4, 8192, %s165_s6, %s151_s7, %s1500_s8, %s1501_s9, %s1502_s10  }
  0x14   : > { %p180_p12 = pnand %p1026_p10, %p179_p11 }
  0x15   : > { %s185_s11 = sand.u32 (!%p180_p12), 1, %s1482_s13  }
  0x16   : > { %183 = sbr.rel (%p180_p12) target bundleno = 307 (0x133), region = 32  ;;  %s1027_s12 = sshll.u32 (!%p180_p12), %s185_s11, 9 }
  0x17   : > { %s186_s18 = scalar_lea.sflag (!%p180_p12), [#allocation4], %s185_s11  ;;  %s1586_s20 = scalar_lea.vmem (!%p180_p12), [#allocation3], %s1027_s12 }
  0x1b   : > { %1473 = dma.done.wait (%p1568_p7), %s186_s18, 8192  }
  0x1c   : > { %1475 = vsyncadd (%p1568_p7), %s186_s18, 4294959104  ;;  %v1294_v0 = vld [vmem:[%s1586_s20 + $0x38] sm:$0xff]  ;;  %v1293_v4 = vld [vmem:[%s1586_s20 + $0x30] sm:$0xff]  ;;  %p216_p13 = scmp.lt.s32.totalorder %s1490_s15, 1  ;;  %vm890_vm0 = vcmask 1041408  }
  0x1d   : > { %v1302_v1 = vld [vmem:[%s1586_s20 + $0x78] sm:$0xff]  ;;  %777 = vmatpush.bf16.msra.mxu0 %v1294_v0  ;;  %v1301_v5 = vld [vmem:[%s1586_s20 + $0x70] sm:$0xff]  ;;  %v1292_v8 = vld [vmem:[%s1586_s20 + $0x28] sm:$0xff] }
  0x1e   : > { %v1310_v2 = vld [vmem:[%s1586_s20 + $0xb8] sm:$0xff]  ;;  %790 = vmatpush.bf16.msra.mxu1 %v1302_v1  ;;  %v1309_v6 = vld [vmem:[%s1586_s20 + $0xb0] sm:$0xff]  ;;  %v1300_v9 = vld [vmem:[%s1586_s20 + $0x68] sm:$0xff]  ;;  %s1713_s15 = smov (!%p216_p13, %s1490_s15), 1 }
  0x1f   : > { %v1318_v3 = vld [vmem:[%s1586_s20 + $0xf8] sm:$0xff]  ;;  %803 = vmatpush.bf16.msra.mxu2 %v1310_v2  ;;  %v1317_v7 = vld [vmem:[%s1586_s20 + $0xf0] sm:$0xff]  ;;  %v1308_v10 = vld [vmem:[%s1586_s20 + $0xa8] sm:$0xff]  ;;  %s1028_s26 = sshll.u32 %s1713_s15, 2  ;;  %s222_s5 = scalar_lea.vmem %s1702_s3, %s1713_s15 }
  0x20   : > { %816 = vmatpush.bf16.msra.mxu3 %v1318_v3  ;;  %v1316_v11 = vld [vmem:[%s1586_s20 + $0xe8] sm:$0xff]  ;;  %v1291_v12 = vld [vmem:[%s1586_s20 + $0x20] sm:$0xff]  ;;  %v233_v16 = vld [vmem:[%s1699_s0] sm:$0xff]  ;;  %s1670_s29 = scalar_lea.vmem %s1701_s2, %s1028_s26 }
  0x21   : > { %778 = vmatpush.bf16.msra.mxu0 %v1293_v4  ;;  %v1299_v13 = vld [vmem:[%s1586_s20 + $0x60] sm:$0xff]  ;;  %v1290_v17 = vld [vmem:[%s1586_s20 + $0x18] sm:$0xff]  ;;  %237 = vst [vmem:[#allocation1] ss:$4 sm:$0xff] %v233_v16  ;;  %v1289_v21 = vld [vmem:[%s1586_s20 + $0x10] sm:$0xff] }
  0x22   : > { %791 = vmatpush.bf16.msra.mxu1 %v1301_v5  ;;  %v1307_v14 = vld [vmem:[%s1586_s20 + $0xa0] sm:$0xff]  ;;  %v1298_v18 = vld [vmem:[%s1586_s20 + $0x58] sm:$0xff]  ;;  %v1297_v22 = vld [vmem:[%s1586_s20 + $0x50] sm:$0xff] }
  0x23   : > { %804 = vmatpush.bf16.msra.mxu2 %v1309_v6  ;;  %v1315_v15 = vld [vmem:[%s1586_s20 + $0xe0] sm:$0xff]  ;;  %v1306_v19 = vld [vmem:[%s1586_s20 + $0x98] sm:$0xff]  ;;  %v1305_v23 = vld [vmem:[%s1586_s20 + $0x90] sm:$0xff] }
  0x24   : > { %817 = vmatpush.bf16.msra.mxu3 %v1317_v7  ;;  %v1314_v20 = vld [vmem:[%s1586_s20 + $0xd8] sm:$0xff]  ;;  %v1313_v24 = vld [vmem:[%s1586_s20 + $0xd0] sm:$0xff]  ;;  %v1288_v25 = vld [vmem:[%s1586_s20 + $0x8] sm:$0xff] }
  0x25   : > { %779 = vmatpush.bf16.msra.mxu0 %v1292_v8  ;;  %v1296_v26 = vld [vmem:[%s1586_s20 + $0x48] sm:$0xff]  ;;  %v234_v29 = vld [vmem:[%s1699_s0 + $0x8] sm:$0xff]  ;;  %v1325_v46 = vld [vmem:[%s1586_s20 + $0x130] sm:$0xff] }
  0x26   : > { %792 = vmatpush.bf16.msra.mxu1 %v1300_v9  ;;  %v1304_v27 = vld [vmem:[%s1586_s20 + $0x88] sm:$0xff]  ;;  %v1287_v30 = vld [vmem:[%s1586_s20] sm:$0xff]  ;;  %239 = vst [vmem:[#allocation1 + $0x20] ss:$4 sm:$0xff] %v234_v29  ;;  %v1326_v34 = vld [vmem:[%s1586_s20 + $0x138] sm:$0xff] }
  0x27   : > { %805 = vmatpush.bf16.msra.mxu2 %v1308_v10  ;;  %v1312_v28 = vld [vmem:[%s1586_s20 + $0xc8] sm:$0xff]  ;;  %v1295_v31 = vld [vmem:[%s1586_s20 + $0x40] sm:$0xff]  ;;  %v1334_v35 = vld [vmem:[%s1586_s20 + $0x178] sm:$0xff] }
  0x28   : > { %818 = vmatpush.bf16.msra.mxu3 %v1316_v11  ;;  %v1303_v32 = vld [vmem:[%s1586_s20 + $0x80] sm:$0xff]  ;;  %v240_v37 = vld.sshfl [vmem:[#allocation1] sm:$0xff pattern:$0x73625140]  ;;  %v1324_v50 = vld [vmem:[%s1586_s20 + $0x128] sm:$0xff] }
  0x29   : > { %780 = vmatpush.bf16.msra.mxu0 %v1291_v12  ;;  %v1311_v33 = vld [vmem:[%s1586_s20 + $0xc0] sm:$0xff]  ;;  %v243_v38 = vld.sshfl [vmem:[#allocation1 + $0x18] sm:$0xff pattern:$0x73625140]  ;;  %v1342_v40 = vld [vmem:[%s1586_s20 + $0x1b8] sm:$0xff]  ;;  %v256_v43 = vpack.c.bf16 %v240_v37, %v240_v37 }
  0x2a   : > { %793 = vmatpush.bf16.msra.mxu1 %v1299_v13  ;;  %v242_v36 = vld.sshfl [vmem:[#allocation1 + $0x10] sm:$0xff pattern:$0x73625140]  ;;  %v241_v39 = vld.sshfl [vmem:[#allocation1 + $0x8] sm:$0xff pattern:$0x73625140]  ;;  %v259_v44 = vpack.c.bf16 %v243_v38, %v243_v38 }
  0x2b   : > { %806 = vmatpush.bf16.msra.mxu2 %v1307_v14  ;;  %v1350_v41 = vld [vmem:[%s1586_s20 + $0x1f8] sm:$0xff]  ;;  %v258_v42 = vpack.c.bf16 %v242_v36, %v242_v36  ;;  %v257_v45 = vpack.c.bf16 %v241_v39, %v241_v39  ;;  %v1333_v47 = vld [vmem:[%s1586_s20 + $0x170] sm:$0xff]  ;;  %v1332_v51 = vld [vmem:[%s1586_s20 + $0x168] sm:$0xff] }
  0x2c   : > { %819 = vmatpush.bf16.msra.mxu3 %v1315_v15  ;;  %v1341_v48 = vld [vmem:[%s1586_s20 + $0x1b0] sm:$0xff]  ;;  %v1340_v52 = vld [vmem:[%s1586_s20 + $0x1a8] sm:$0xff]  ;;  %v1323_v54 = vld [vmem:[%s1586_s20 + $0x120] sm:$0xff] }
  0x2d   : > { %781 = vmatpush.bf16.msra.mxu0 %v1290_v17  ;;  %v1349_v49 = vld [vmem:[%s1586_s20 + $0x1f0] sm:$0xff]  ;;  %v1348_v53 = vld [vmem:[%s1586_s20 + $0x1e8] sm:$0xff]  ;;  %v1331_v55 = vld [vmem:[%s1586_s20 + $0x160] sm:$0xff] }
  0x2e   : > { %794 = vmatpush.bf16.msra.mxu1 %v1298_v18  ;;  %v1339_v56 = vld [vmem:[%s1586_s20 + $0x1a0] sm:$0xff]  ;;  %v1322_v58 = vld [vmem:[%s1586_s20 + $0x118] sm:$0xff]  ;;  %v1321_v62 = vld [vmem:[%s1586_s20 + $0x110] sm:$0xff] }
  0x2f   : > { %807 = vmatpush.bf16.msra.mxu2 %v1306_v19  ;;  %v1347_v57 = vld [vmem:[%s1586_s20 + $0x1e0] sm:$0xff]  ;;  %v1330_v59 = vld [vmem:[%s1586_s20 + $0x158] sm:$0xff]  ;;  %v1329_v63 = vld [vmem:[%s1586_s20 + $0x150] sm:$0xff] }
  0x30   : > { %820 = vmatpush.bf16.msra.mxu3 %v1314_v20  ;;  %v1338_v60 = vld [vmem:[%s1586_s20 + $0x198] sm:$0xff]  ;;  %v1337_v0 = vld [vmem:[%s1586_s20 + $0x190] sm:$0xff]  ;;  %v1320_v2 = vld [vmem:[%s1586_s20 + $0x108] sm:$0xff]  ;;  %v1503_v20 = vmov 0.0  }
  0x31   : > { %782 = vmatpush.bf16.msra.mxu0 %v1289_v21  ;;  %v1346_v61 = vld [vmem:[%s1586_s20 + $0x1d8] sm:$0xff]  ;;  %v1345_v1 = vld [vmem:[%s1586_s20 + $0x1d0] sm:$0xff]  ;;  %v1328_v3 = vld [vmem:[%s1586_s20 + $0x148] sm:$0xff]  ;;  %227 = vst [vmem:[#allocation2] sm:$0x3] %v1503_v20 }
  0x32   : > { %795 = vmatpush.bf16.msra.mxu1 %v1297_v22  ;;  %v1336_v4 = vld [vmem:[%s1586_s20 + $0x188] sm:$0xff]  ;;  %v1319_v6 = vld [vmem:[%s1586_s20 + $0x100] sm:$0xff]  ;;  %v244_v10 = vld.sshfl [vmem:[#allocation1 + $0x20] sm:$0xff pattern:$0x73625140] }
  0x33   : > { %808 = vmatpush.bf16.msra.mxu2 %v1305_v23  ;;  %v1344_v5 = vld [vmem:[%s1586_s20 + $0x1c8] sm:$0xff]  ;;  %v1327_v7 = vld [vmem:[%s1586_s20 + $0x140] sm:$0xff]  ;;  %v260_v14 = vpack.c.bf16 %v244_v10, %v244_v10 }
  0x34   : > { %821 = vmatpush.bf16.msra.mxu3 %v1313_v24  ;;  %v1335_v8 = vld [vmem:[%s1586_s20 + $0x180] sm:$0xff]  ;;  %v247_v13 = vld.sshfl [vmem:[#allocation1 + $0x38] sm:$0xff pattern:$0x73625140] }
  0x35   : > { %783 = vmatpush.bf16.msra.mxu0 %v1288_v25  ;;  %v1343_v9 = vld [vmem:[%s1586_s20 + $0x1c0] sm:$0xff]  ;;  %v263_v17 = vpack.c.bf16 %v247_v13, %v247_v13 }
  0x36   : > { %796 = vmatpush.bf16.msra.mxu1 %v1296_v26  ;;  %v245_v11 = vld.sshfl [vmem:[#allocation1 + $0x28] sm:$0xff pattern:$0x73625140]  ;;  %v246_v12 = vld.sshfl [vmem:[#allocation1 + $0x30] sm:$0xff pattern:$0x73625140] }
  0x37   : > { %809 = vmatpush.bf16.msra.mxu2 %v1304_v27  ;;  %v261_v15 = vpack.c.bf16 %v245_v11, %v245_v11  ;;  %v262_v16 = vpack.c.bf16 %v246_v12, %v246_v12 }
  0x38   : > { %822 = vmatpush.bf16.msra.mxu3 %v1312_v28  ;;  %v264_v39 = vld [vmem:[#allocation2] sm:$0x3] }
  0x39   : > { %784 = vmatpush.bf16.msra.mxu0 %v1287_v30 }
  0x3a   : > { %797 = vmatpush.bf16.msra.mxu1 %v1295_v31 }
  0x3b   : > { %810 = vmatpush.bf16.msra.mxu2 %v1303_v32 }
  0x3c   : > { %823 = vmatpush.bf16.msra.mxu3 %v1311_v33  ;;  %785 = vmatmul.bf16.vlgmr.msra.gmra.mxu0 %v256_v43 }
  0x3d   : > { %829 = vmatpush.bf16.msrb.mxu0 %v1326_v34  ;;  %798 = vmatmul.bf16.vlgmr.msra.gmra.mxu1 %v257_v45 }
  0x3e   : > { %842 = vmatpush.bf16.msrb.mxu1 %v1334_v35  ;;  %811 = vmatmul.bf16.vlgmr.msra.gmra.mxu2 %v258_v42 }
  0x3f   : > { %855 = vmatpush.bf16.msrb.mxu2 %v1342_v40  ;;  %824 = vmatmul.bf16.vlgmr.msra.gmra.mxu3 %v259_v44  ;;  %v1504_v40 = vmov 2.0  }
  0x40   : > { %868 = vmatpush.bf16.msrb.mxu3 %v1350_v41  ;;  %1414 = vrcp.f32 %v1504_v40 }
  0x41   : > { %830 = vmatpush.bf16.msrb.mxu0 %v1325_v46  ;;  %v1411_v46 = vld [vmem:[%s1670_s29] ss:$0 sm:$0xff] }
  0x42   : > { %843 = vmatpush.bf16.msrb.mxu1 %v1333_v47 }
  0x43   : > { %856 = vmatpush.bf16.msrb.mxu2 %v1341_v48 }
  0x44   : > { %869 = vmatpush.bf16.msrb.mxu3 %v1349_v49 }
  0x45   : > { %831 = vmatpush.bf16.msrb.mxu0 %v1324_v50 }
  0x46   : > { %844 = vmatpush.bf16.msrb.mxu1 %v1332_v51  ;;  %v1415_v43 = vpop.eup %1414 }
  0x47   : > { %857 = vmatpush.bf16.msrb.mxu2 %v1340_v52  ;;  %v899_v47 = vmul.f32 2.0, %v1415_v43  ;;  %vm903_vm1 = vweird.f32 %v1415_v43 }
  0x48   : > { %870 = vmatpush.bf16.msrb.mxu3 %v1348_v53 }
  0x49   : > { %832 = vmatpush.bf16.msrb.mxu0 %v1323_v54  ;;  %v900_v50 = vsub.f32 1.0, %v899_v47 }
  0x4a   : > { %845 = vmatpush.bf16.msrb.mxu1 %v1331_v55 }
  0x4b   : > { %858 = vmatpush.bf16.msrb.mxu2 %v1339_v56  ;;  %v901_v53 = vmul.f32 %v1415_v43, %v900_v50 }
  0x4c   : > { %871 = vmatpush.bf16.msrb.mxu3 %v1347_v57 }
  0x4d   : > { %833 = vmatpush.bf16.msrb.mxu0 %v1322_v58  ;;  %v902_v56 = vadd.f32 %v1415_v43, %v901_v53 }
  0x4e   : > { %846 = vmatpush.bf16.msrb.mxu1 %v1330_v59 }
  0x4f   : > { %859 = vmatpush.bf16.msrb.mxu2 %v1338_v60  ;;  %v904_v59 = vsel %vm903_vm1, %v1415_v43, %v902_v56 }
  0x50   : > { %872 = vmatpush.bf16.msrb.mxu3 %v1346_v61 }
  0x51   : > { %834 = vmatpush.bf16.msrb.mxu0 %v1321_v62 }
  0x52   : > { %847 = vmatpush.bf16.msrb.mxu1 %v1329_v63 }
  0x53   : > { %860 = vmatpush.bf16.msrb.mxu2 %v1337_v0 }
  0x54   : > { %873 = vmatpush.bf16.msrb.mxu3 %v1345_v1 }
  0x55   : > { %835 = vmatpush.bf16.msrb.mxu0 %v1320_v2 }
  0x56   : > { %848 = vmatpush.bf16.msrb.mxu1 %v1328_v3 }
  0x57   : > { %861 = vmatpush.bf16.msrb.mxu2 %v1336_v4 }
  0x58   : > { %874 = vmatpush.bf16.msrb.mxu3 %v1344_v5 }
  0x59   : > { %836 = vmatpush.bf16.msrb.mxu0 %v1319_v6 }
  0x5a   : > { %849 = vmatpush.bf16.msrb.mxu1 %v1327_v7 }
  0x5b   : > { %862 = vmatpush.bf16.msrb.mxu2 %v1335_v8 }
  0x5c   : > { %875 = vmatpush.bf16.msrb.mxu3 %v1343_v9  ;;  %837 = vmatmul.bf16.vlgmr.msrb.gmra.mxu0 %v260_v14 }
  0x5d   : > { %850 = vmatmul.bf16.vlgmr.msrb.gmra.mxu1 %v261_v15  ;;  %v1412_v15 = vld [vmem:[%s1670_s29 + $0x1] ss:$0 sm:$0xff] }
  0x5e   : > { %863 = vmatmul.bf16.vlgmr.msrb.gmra.mxu2 %v262_v16 }
  0x5f   : > { %876 = vmatmul.bf16.vlgmr.msrb.gmra.mxu3 %v263_v17 }
  0xb9   : > { %v786_v18 = vpop.f32.mrf.mxu0 }
  0xba   : > { %v799_v19 = vpop.f32.mrf.mxu1 }
  0xbb   : > { %v800_v27 = vadd.f32 %v799_v19, %v786_v18  ;;  %v1413_v18 = vld [vmem:[%s1670_s29 + $0x2] ss:$0 sm:$0xff] }
  0xc1   : > { %v812_v21 = vpop.f32.mrf.mxu2  ;;  %v788_v23 = vpop.f32.mrf.mxu0 }
  0xc2   : > { %v825_v22 = vpop.f32.mrf.mxu3  ;;  %v801_v24 = vpop.f32.mrf.mxu1  ;;  %v813_v28 = vadd.f32 %v812_v21, %v800_v27 }
  0xc4   : > { %v826_v29 = vadd.f32 %v825_v22, %v813_v28 }
  0xc9   : > { %v814_v25 = vpop.f32.mrf.mxu2 }
  0xca   : > { %v827_v26 = vpop.f32.mrf.mxu3 }
  0xd9   : > { %v838_v30 = vpop.f32.mrf.mxu0 }
  0xda   : > { %v851_v31 = vpop.f32.mrf.mxu1  ;;  %v839_v32 = vadd.f32 %v838_v30, %v826_v29 }
  0xdc   : > { %v852_v33 = vadd.f32 %v851_v31, %v839_v32 }
  0xe1   : > { %v864_v34 = vpop.f32.mrf.mxu2  ;;  %v840_v37 = vpop.f32.mrf.mxu0 }
  0xe2   : > { %v877_v35 = vpop.f32.mrf.mxu3  ;;  %v865_v36 = vadd.f32 %v864_v34, %v852_v33  ;;  %v853_v38 = vpop.f32.mrf.mxu1 }
  0xe4   : > { %v878_v41 = vadd.f32 %v877_v35, %v865_v36 }
  0xe6   : > { %v881_v42 = vadd.f32 %v878_v41, %v264_v39 }
  0xe8   : > { %882 = vst [vmem:[#allocation2] sm:$0x3] %v881_v42 }
  0xe9   : > { %v866_v44 = vpop.f32.mrf.mxu2 }
  0xea   : > { %v879_v45 = vpop.f32.mrf.mxu3 }
  0xef   : > { %v886_v48 = vld [vmem:[#allocation2] sm:$0x3] }
  0xf0   : > { %v889_v49 = vadd.f32 %v1411_v46, %v886_v48 }
  0xf2   : > { %v891_v51 = vsel %vm890_vm0, %v889_v49, 0.0 }
  0xf3   : > { %v892_v52 = vrot.slane %v891_v51, 4 }
  0xf5   : > { %v893_v54 = vadd.f32 %v892_v52, %v891_v51 }
  0xf7   : > { %v894_v55 = vrot.slane %v893_v54, 2 }
  0xf9   : > { %v895_v57 = vadd.f32 %v894_v55, %v893_v54 }
  0xfb   : > { %v896_v58 = vrot.slane %v895_v57, 1 }
  0xfd   : > { %v897_v60 = vadd.f32 %v896_v58, %v895_v57 }
  0xff   : > { %v905_v61 = vmul.f32 %v904_v59, %v897_v60 }
 0x101   : > { %v906_v62 = vsub.f32 %v889_v49, %v905_v61 }
 0x103   : > { %v907_v63 = vmul.f32 %v906_v62, %v906_v62 }
 0x105   : > { %v908_v0 = vsel %vm890_vm0, %v907_v63, 0.0 }
 0x106   : > { %v909_v1 = vrot.slane %v908_v0, 4 }
 0x108   : > { %v910_v2 = vadd.f32 %v909_v1, %v908_v0 }
 0x10a   : > { %v911_v3 = vrot.slane %v910_v2, 2 }
 0x10c   : > { %v912_v4 = vadd.f32 %v911_v3, %v910_v2 }
 0x10e   : > { %v913_v5 = vrot.slane %v912_v4, 1 }
 0x110   : > { %v914_v6 = vadd.f32 %v913_v5, %v912_v4 }
 0x112   : > { %v915_v7 = vmul.f32 %v914_v6, %v904_v59 }
 0x114   : > { %v916_v8 = vadd.f32 1e-05, %v915_v7 }
 0x116   : > { %1416 = vrsqrt.f32 %v916_v8  ;;  %vm923_vm3 = vweird.f32 %v916_v8 }
 0x11c   : > { %v1417_v9 = vpop.eup %1416 }
 0x11d   : > { %v918_v10 = vmul.f32 %v1417_v9, %v916_v8  ;;  %vm924_vm2 = vweird.f32 %v1417_v9 }
 0x11e   : > { %vm925_vm4 = vmor %vm923_vm3, %vm924_vm2 }
 0x11f   : > { %v919_v11 = vmul.f32 %v1417_v9, %v918_v10 }
 0x121   : > { %v920_v12 = vmul.f32 0.5, %v919_v11 }
 0x123   : > { %v921_v13 = vsub.f32 1.5, %v920_v12 }
 0x125   : > { %v922_v14 = vmul.f32 %v1417_v9, %v921_v13 }
 0x127   : > { %v926_v16 = vsel %vm925_vm4, %v1417_v9, %v922_v14 }
 0x128   : > { %v927_v17 = vmul.f32 %v926_v16, %v906_v62 }
 0x12a   : > { %v930_v19 = vmul.f32 %v1412_v15, %v927_v17 }
 0x12c   : > { %v933_v20 = vadd.f32 %v1413_v18, %v930_v19 }
 0x12e   : > { %v934_v21 = vmax.f32 %v933_v20, 0.0 }
 0x130   : > { %v935_v22 = vpack.c.bf16 %v934_v21, %v934_v21 }
 0x132   : > { %936 = vst [vmem:[%s222_s5] sm:$0x1] %v935_v22 }
 0x133 PF: > { %s16_s17 = sadd.s32 1, %s1498_s17   ;;  %s1705_s12 = smov %s1482_s13 }
 0x134   : > { %p13_p0 = scmp.ge.s32.totalorder %s16_s17, 4   ;;  %s1706_s13 = smov %s1486_s14 }
 0x135   : > { %s1707_s14 = smov %s1574_s24  ;;  %s1708_s15 = smov %s1494_s16 }
 0x136   : > { %s1709_s16 = smov %s1711_s19  ;;  %15 = sbr.rel (!%p13_p0) target bundleno = 4 (0x4), region = 85 }
 0x13b   :  { %954 = vsyncpa [#allocation4], 1 }
 0x13c   :  { %956 = vsyncpa [#allocation4 + $0x1], 1 }

</bundles_post_ra>
